<compile_context>
chip_gen: v5e
topology: v5e:2x2
jax: 0.10.0
libtpu: 0.0.40
codegen_flags: <defaults>
</compile_context>

<pallas_src>
import jax
import jax.numpy as jnp
from jax.experimental import pallas as pl
from jax.experimental.pallas import tpu as pltpu


# ------------------------------ Fused kernel ---------------------------------
def _make_fused_kernel(T1, T2, B, H, D, V, NBP):
    """Builds the fused forward kernel for static (T1, T2, B, H, D, V, NBP)."""
    NB = 2 * B
    T_max = max(T1, T2)
    TN = T_max * NBP

    def cell(gates_x, h, c, w_hh, *, first=False):
        # gates_x already contains x @ W_ih + (b_ih + b_hh).  PyTorch gate
        # order i,f,g,o.  `first=True` => h == c == 0, so the recurrent
        # matmul and the f*c term are statically elided.
        if first:
            gates = gates_x
        else:
            gates = gates_x + jnp.dot(h, w_hh, preferred_element_type=jnp.float32)
        # One sigmoid + one tanh over the full (rows, 4H) tile; slice after.
        sg = jax.nn.sigmoid(gates)
        tg = jnp.tanh(gates)
        i_g = sg[:, 0:H]
        f_g = sg[:, H:2 * H]
        o_g = sg[:, 3 * H:4 * H]
        g_g = tg[:, 2 * H:3 * H]
        c_new = i_g * g_g if first else f_g * c + i_g * g_g
        h_new = o_g * jnp.tanh(c_new)
        return h_new, c_new

    def kernel(ids_ref,                  # (TN, 1) int32: row t*NBP + r = id of batch-row r at time t
               emb_ref,                  # (V, D)
               w0_ref, b0_ref,           # (D+H, 4H), (1, 4H)   layer 0
               w1_ref, b1_ref,           # (2H, 4H), (1, 4H)    layer 1
               fcw_ref, fcb_ref,         # (H, 2), (1, 2)
               out_ref):                 # (B, 2)
        # Hoist all weight loads / splits out of the unrolled loops.
        emb = emb_ref[...]
        w0 = w0_ref[...]
        w_ih0 = w0[0:D, :]
        w_hh0 = w0[D:D + H, :]
        w1 = w1_ref[...]
        w_ih1 = w1[0:H, :]
        w_hh1 = w1[H:2 * H, :]
        b0 = b0_ref[...]
        b1 = b1_ref[...]

        # ---- Phase 0: embedding lookup + input projection, hoisted out of the
        # recurrence.  One vectorized compare builds the whole one-hot; the
        # gather is an exact matmul; b0 is folded in once.
        iota_v = jax.lax.broadcasted_iota(jnp.int32, (TN, V), 1)
        onehot = (iota_v == ids_ref[...]).astype(jnp.float32)              # (TN, V)
        x_all = jnp.dot(onehot, emb, preferred_element_type=jnp.float32)   # (TN, D)
        gates_x_all = (jnp.dot(x_all, w_ih0, preferred_element_type=jnp.float32)
                       + b0)                                               # (TN, 4H)

        # ---- Phase 1: query & answer sentence encoders (layer 0), batched
        # along rows: [0,B)=query, [B,2B)=answer, [2B,NBP)=padding (never read).
        row = jax.lax.broadcasted_iota(jnp.int32, (NBP, 1), 0)
        h = jnp.zeros((NBP, H), jnp.float32)
        c = jnp.zeros((NBP, H), jnp.float32)
        for t in range(T_max):
            gx = gates_x_all[t * NBP:(t + 1) * NBP, :]
            h_new, c_new = cell(gx, h, c, w_hh0, first=(t == 0))
            q_ok = t < T1
            a_ok = t < T2
            if q_ok and a_ok:                    # both sequences still active
                h, c = h_new, c_new
            else:                                # static mask past true length
                m = (row < B) if q_ok else (row >= B)
                h = jnp.where(m, h_new, h)
                c = jnp.where(m, c_new, c)

        # Only layer-0 cell states feed the context encoder (torch: hidden[-1][0]).
        # ---- Phase 2: 2-step / 2-layer context encoder (same lstm_encoder
        # weights).  Layer-0 input projections for both steps in one matmul.
        gx_ctx = jnp.dot(c, w_ih0, preferred_element_type=jnp.float32) + b0  # (NBP, 4H)
        h0, c0 = cell(gx_ctx[0:B, :], None, None, w_hh0, first=True)         # step 0: que_c
        y0 = h0
        h0, c0 = cell(gx_ctx[B:NB, :], h0, c0, w_hh0)                        # step 1: ans_c
        y1 = h0

        b1_b = jnp.broadcast_to(b1, (B, 4 * H))                              # hoisted
        gx1 = jnp.dot(y0, w_ih1, preferred_element_type=jnp.float32) + b1_b
        h1, c1 = cell(gx1, None, None, w_hh1, first=True)
        gx1 = jnp.dot(y1, w_ih1, preferred_element_type=jnp.float32) + b1_b
        h1, c1 = cell(gx1, h1, c1, w_hh1)
        out_hidden = c1                           # torch: con_hidden[-1][1]

        # ---- Phase 3: fc + sigmoid head (single tiny masked store is fine).
        out_ref[...] = jax.nn.sigmoid(
            jnp.dot(out_hidden, fcw_ref[...], preferred_element_type=jnp.float32)
            + fcb_ref[...])

    return kernel


# ------------------------------ Model wrapper ---------------------------------
def hierarchical_encoder_forward(params, query, answer):
    """query: (T1, B) int32; answer: (T2, B) int32 -> logits (B, 2)."""
    T1, B = query.shape
    T2, B2 = answer.shape
    assert B == B2
    assert len(params["lstm"]) >= 2, "forward needs layer_num >= 2"

    emb = params["embedding"]                     # (V_pad, D)
    V, D = emb.shape
    w0 = params["lstm"][0]["w"]                   # (D+H, 4H)
    b0 = params["lstm"][0]["b"]                   # (1, 4H)
    w1 = params["lstm"][1]["w"]                   # (2H, 4H)
    b1 = params["lstm"][1]["b"]                   # (1, 4H)
    fc_w = params["fc_w_t"]                       # (H, 2)
    fc_b = params["fc_b"]                         # (1, 2)
    H = w0.shape[1] // 4
    assert D == H, "encoder_context requires input_size == hidden_size"

    T_max = max(T1, T2)
    NB = 2 * B
    NBP = ((NB + 7) // 8) * 8                     # pad rows to a sublane multiple
    ids = jnp.zeros((T_max, NBP), jnp.int32)      # pad ids = 0 (valid token, rows unused)
    ids = ids.at[:T1, :B].set(query)
    ids = ids.at[:T2, B:NB].set(answer)
    ids_flat = ids.reshape(T_max * NBP, 1)        # row t*NBP + r

    kernel = _make_fused_kernel(T1, T2, B, H, D, V, NBP)

    grid_spec = pltpu.PrefetchScalarGridSpec(
        num_scalar_prefetch=0,
        grid=(1,),
        in_specs=[
            pl.BlockSpec(ids_flat.shape, lambda i: (0, 0)),
            pl.BlockSpec(emb.shape, lambda i: (0, 0)),
            pl.BlockSpec(w0.shape, lambda i: (0, 0)),
            pl.BlockSpec(b0.shape, lambda i: (0, 0)),
            pl.BlockSpec(w1.shape, lambda i: (0, 0)),
            pl.BlockSpec(b1.shape, lambda i: (0, 0)),
            pl.BlockSpec(fc_w.shape, lambda i: (0, 0)),
            pl.BlockSpec(fc_b.shape, lambda i: (0, 0)),
        ],
        out_specs=pl.BlockSpec((B, 2), lambda i: (0, 0)),
    )

    return pl.pallas_call(
        kernel,
        out_shape=jax.ShapeDtypeStruct((B, 2), jnp.float32),
        grid_spec=grid_spec,
        compiler_params=pltpu.CompilerParams(
            dimension_semantics=("arbitrary",)),
    )(ids_flat, emb, w0, b0, w1, b1, fc_w, fc_b)


# ------------------------------ Parameter init --------------------------------
def init_params(key, vocab_size, input_size, hidden_size, layer_num):
    H = hidden_size
    k = 1.0 / jnp.sqrt(jnp.float32(H))
    keys = jax.random.split(key, 3 + 4 * layer_num)

    # Pad the embedding table sublane dim to a multiple of 8 (padded rows are
    # never selected because token ids < vocab_size).
    v_pad = ((vocab_size + 7) // 8) * 8
    emb = jax.random.normal(keys[0], (vocab_size, input_size), jnp.float32)
    emb = jnp.pad(emb, ((0, v_pad - vocab_size), (0, 0)))

    params = {
        "embedding": emb,
        "lstm": [],
        "fc_w_t": jax.random.uniform(keys[1], (H, 2), jnp.float32, -k, k),
        "fc_b": jax.random.uniform(keys[2], (1, 2), jnp.float32, -k, k),
    }
    for l in range(layer_num):
        d_in = input_size if l == 0 else H
        kw = keys[3 + 4 * l: 3 + 4 * (l + 1)]
        w_ih = jax.random.uniform(kw[0], (4 * H, d_in), jnp.float32, -k, k)
        w_hh = jax.random.uniform(kw[1], (4 * H, H), jnp.float32, -k, k)
        b_ih = jax.random.uniform(kw[2], (4 * H,), jnp.float32, -k, k)
        b_hh = jax.random.uniform(kw[3], (4 * H,), jnp.float32, -k, k)
        params["lstm"].append({
            # stacked [W_ih; W_hh]^T : (d_in + H, 4H)
            "w": jnp.concatenate([w_ih.T, w_hh.T], axis=0),
            "b": (b_ih + b_hh).reshape(1, 4 * H),
        })
    return params


# ------------------------------ Pure-JAX reference ----------------------------
def _lstm_layer_ref(x, w, b):
    T, B, din = x.shape
    H = w.shape[1] // 4
    w_ih_t = w[:din]
    w_hh_t = w[din:]
    h = jnp.zeros((B, H), jnp.float32)
    c = jnp.zeros((B, H), jnp.float32)
    outs = []
    for t in range(T):
        gates = x[t] @ w_ih_t + h @ w_hh_t + b
        i = jax.nn.sigmoid(gates[:, 0:H])
        f = jax.nn.sigmoid(gates[:, H:2 * H])
        g = jnp.tanh(gates[:, 2 * H:3 * H])
        o = jax.nn.sigmoid(gates[:, 3 * H:4 * H])
        c = f * c + i * g
        h = o * jnp.tanh(c)
        outs.append(h)
    return jnp.stack(outs), h, c


def _forward_ref(params, query, answer):
    def run(x):
        hs, cs = [], []
        for layer in params["lstm"]:
            x, h, c = _lstm_layer_ref(x, layer["w"], layer["b"])
            hs.append(h)
            cs.append(c)
        return jnp.stack(hs), jnp.stack(cs)

    emb = params["embedding"]
    _, qc = run(jnp.take(emb, query, axis=0))
    _, ac = run(jnp.take(emb, answer, axis=0))
    ctx = jnp.concatenate([qc[0][None], ac[0][None]], axis=0)
    _, cc = run(ctx)
    return jax.nn.sigmoid(cc[1] @ params["fc_w_t"] + params["fc_b"])


# ----------------------------------- Main --------------------------------------
if __name__ == "__main__":
    vocab_size = 20
    batch_size = 2
    input_size = 32
    hidden_size = 32
    layer_num = 2
    T1, T2 = 8, 6

    key = jax.random.PRNGKey(0)
    k_par, k_q, k_a = jax.random.split(key, 3)
    params = init_params(k_par, vocab_size, input_size, hidden_size, layer_num)

    query = jax.random.randint(k_q, (T1, batch_size), 0, vocab_size, jnp.int32)
    answer = jax.random.randint(k_a, (T2, batch_size), 0, vocab_size, jnp.int32)

    fwd = jax.jit(hierarchical_encoder_forward)
    logits = jax.block_until_ready(fwd(params, query, answer))

    ref = jax.block_until_ready(_forward_ref(params, query, answer))
    assert logits.shape == (batch_size, 2)
    assert jnp.allclose(logits, ref, atol=1e-4), (logits, ref)

    print("KERNEL_OK")
</pallas_src>

<mosaic_0001>
module attributes {stable_mosaic.version = 11 : i64} {
  func.func @kernel(%arg0: i32, %arg1: memref<64x1xi32, #tpu.memory_space<vmem>>, %arg2: memref<24x32xf32, #tpu.memory_space<vmem>>, %arg3: memref<64x128xf32, #tpu.memory_space<vmem>>, %arg4: memref<1x128xf32, #tpu.memory_space<vmem>>, %arg5: memref<64x128xf32, #tpu.memory_space<vmem>>, %arg6: memref<1x128xf32, #tpu.memory_space<vmem>>, %arg7: memref<32x2xf32, #tpu.memory_space<vmem>>, %arg8: memref<1x2xf32, #tpu.memory_space<vmem>>, %arg9: memref<2x2xf32, #tpu.memory_space<vmem>>) attributes {dimension_semantics = [#tpu.dimension_semantics<arbitrary>], iteration_bounds = array<i64: 1>, scalar_prefetch = 0 : i64, scratch_operands = 0 : i64, tpu.core_type = #tpu.core_type<tc>, window_params = [{pipeline_mode = #tpu.pipeline_mode<synchronous>, transform_indices = @transform_0, window_bounds = array<i64: 64, 1>}, {pipeline_mode = #tpu.pipeline_mode<synchronous>, transform_indices = @transform_1, window_bounds = array<i64: 24, 32>}, {pipeline_mode = #tpu.pipeline_mode<synchronous>, transform_indices = @transform_2, window_bounds = array<i64: 64, 128>}, {pipeline_mode = #tpu.pipeline_mode<synchronous>, transform_indices = @transform_3, window_bounds = array<i64: 1, 128>}, {pipeline_mode = #tpu.pipeline_mode<synchronous>, transform_indices = @transform_4, window_bounds = array<i64: 64, 128>}, {pipeline_mode = #tpu.pipeline_mode<synchronous>, transform_indices = @transform_5, window_bounds = array<i64: 1, 128>}, {pipeline_mode = #tpu.pipeline_mode<synchronous>, transform_indices = @transform_6, window_bounds = array<i64: 32, 2>}, {pipeline_mode = #tpu.pipeline_mode<synchronous>, transform_indices = @transform_7, window_bounds = array<i64: 1, 2>}, {pipeline_mode = #tpu.pipeline_mode<synchronous>, transform_indices = @transform_8, window_bounds = array<i64: 2, 2>}]} {
    %c0 = arith.constant 0 : index
    %c0_0 = arith.constant 0 : index
    %0 = vector.load %arg2[%c0, %c0_0] : memref<24x32xf32, #tpu.memory_space<vmem>>, vector<24x32xf32>
    %c0_1 = arith.constant 0 : index
    %c0_2 = arith.constant 0 : index
    %1 = vector.load %arg3[%c0_1, %c0_2] : memref<64x128xf32, #tpu.memory_space<vmem>>, vector<64x128xf32>
    %2 = vector.extract_strided_slice %1 {offsets = [0, 0], sizes = [32, 128], strides = [1, 1]} : vector<64x128xf32> to vector<32x128xf32>
    %3 = vector.extract_strided_slice %1 {offsets = [32, 0], sizes = [32, 128], strides = [1, 1]} : vector<64x128xf32> to vector<32x128xf32>
    %c0_3 = arith.constant 0 : index
    %c0_4 = arith.constant 0 : index
    %4 = vector.load %arg5[%c0_3, %c0_4] : memref<64x128xf32, #tpu.memory_space<vmem>>, vector<64x128xf32>
    %5 = vector.extract_strided_slice %4 {offsets = [0, 0], sizes = [32, 128], strides = [1, 1]} : vector<64x128xf32> to vector<32x128xf32>
    %6 = vector.extract_strided_slice %4 {offsets = [32, 0], sizes = [32, 128], strides = [1, 1]} : vector<64x128xf32> to vector<32x128xf32>
    %c0_5 = arith.constant 0 : index
    %c0_6 = arith.constant 0 : index
    %7 = vector.load %arg4[%c0_5, %c0_6] : memref<1x128xf32, #tpu.memory_space<vmem>>, vector<1x128xf32>
    %c0_7 = arith.constant 0 : index
    %c0_8 = arith.constant 0 : index
    %8 = vector.load %arg6[%c0_7, %c0_8] : memref<1x128xf32, #tpu.memory_space<vmem>>, vector<1x128xf32>
    %9 = tpu.iota {dimensions = array<i32: 1>} : vector<64x24xi32>
    %c0_9 = arith.constant 0 : index
    %c0_10 = arith.constant 0 : index
    %10 = vector.load %arg1[%c0_9, %c0_10] : memref<64x1xi32, #tpu.memory_space<vmem>>, vector<64x1xi32>
    %11 = vector.broadcast %10 : vector<64x1xi32> to vector<64x24xi32>
    %12 = arith.cmpi eq, %9, %11 : vector<64x24xi32>
    %13 = arith.extui %12 : vector<64x24xi1> to vector<64x24xi32>
    %14 = arith.sitofp %13 : vector<64x24xi32> to vector<64x24xf32>
    %cst = arith.constant dense<0.000000e+00> : vector<64x32xf32>
    %15 = tpu.matmul %14, %0, %cst {dimension_numbers = #tpu.dot_dimension_numbers<[1], [0], [0], [1], [0, 0, 1, 1], [], []>} : vector<64x24xf32>, vector<24x32xf32>, vector<64x32xf32> -> vector<64x32xf32>
    %cst_11 = arith.constant dense<0.000000e+00> : vector<64x128xf32>
    %16 = tpu.matmul %15, %2, %cst_11 {dimension_numbers = #tpu.dot_dimension_numbers<[1], [0], [0], [1], [0, 0, 1, 1], [], []>} : vector<64x32xf32>, vector<32x128xf32>, vector<64x128xf32> -> vector<64x128xf32>
    %17 = vector.broadcast %7 : vector<1x128xf32> to vector<64x128xf32>
    %18 = arith.addf %16, %17 : vector<64x128xf32>
    %19 = tpu.iota {dimensions = array<i32: 0>} : vector<8x1xi32>
    %20 = vector.extract_strided_slice %18 {offsets = [0, 0], sizes = [8, 128], strides = [1, 1]} : vector<64x128xf32> to vector<8x128xf32>
    %21 = arith.negf %20 : vector<8x128xf32>
    %22 = math.exp %21 : vector<8x128xf32>
    %cst_12 = arith.constant 1.000000e+00 : f32
    %23 = vector.broadcast %cst_12 : f32 to vector<8x128xf32>
    %24 = arith.addf %23, %22 : vector<8x128xf32>
    %25 = arith.divf %23, %24 : vector<8x128xf32>
    %26 = math.tanh %20 : vector<8x128xf32>
    %27 = vector.extract_strided_slice %25 {offsets = [0, 0], sizes = [8, 32], strides = [1, 1]} : vector<8x128xf32> to vector<8x32xf32>
    %28 = vector.extract_strided_slice %25 {offsets = [0, 96], sizes = [8, 32], strides = [1, 1]} : vector<8x128xf32> to vector<8x32xf32>
    %29 = vector.extract_strided_slice %26 {offsets = [0, 64], sizes = [8, 32], strides = [1, 1]} : vector<8x128xf32> to vector<8x32xf32>
    %30 = arith.mulf %27, %29 : vector<8x32xf32>
    %31 = math.tanh %30 : vector<8x32xf32>
    %32 = arith.mulf %28, %31 : vector<8x32xf32>
    %33 = vector.extract_strided_slice %18 {offsets = [8, 0], sizes = [8, 128], strides = [1, 1]} : vector<64x128xf32> to vector<8x128xf32>
    %cst_13 = arith.constant dense<0.000000e+00> : vector<8x128xf32>
    %34 = tpu.matmul %32, %3, %cst_13 {dimension_numbers = #tpu.dot_dimension_numbers<[1], [0], [0], [1], [0, 0, 1, 1], [], []>} : vector<8x32xf32>, vector<32x128xf32>, vector<8x128xf32> -> vector<8x128xf32>
    %35 = arith.addf %33, %34 : vector<8x128xf32>
    %36 = arith.negf %35 : vector<8x128xf32>
    %37 = math.exp %36 : vector<8x128xf32>
    %cst_14 = arith.constant 1.000000e+00 : f32
    %38 = vector.broadcast %cst_14 : f32 to vector<8x128xf32>
    %39 = arith.addf %38, %37 : vector<8x128xf32>
    %40 = arith.divf %38, %39 : vector<8x128xf32>
    %41 = math.tanh %35 : vector<8x128xf32>
    %42 = vector.extract_strided_slice %40 {offsets = [0, 0], sizes = [8, 32], strides = [1, 1]} : vector<8x128xf32> to vector<8x32xf32>
    %43 = vector.extract_strided_slice %40 {offsets = [0, 32], sizes = [8, 32], strides = [1, 1]} : vector<8x128xf32> to vector<8x32xf32>
    %44 = vector.extract_strided_slice %40 {offsets = [0, 96], sizes = [8, 32], strides = [1, 1]} : vector<8x128xf32> to vector<8x32xf32>
    %45 = vector.extract_strided_slice %41 {offsets = [0, 64], sizes = [8, 32], strides = [1, 1]} : vector<8x128xf32> to vector<8x32xf32>
    %46 = arith.mulf %43, %30 : vector<8x32xf32>
    %47 = arith.mulf %42, %45 : vector<8x32xf32>
    %48 = arith.addf %46, %47 : vector<8x32xf32>
    %49 = math.tanh %48 : vector<8x32xf32>
    %50 = arith.mulf %44, %49 : vector<8x32xf32>
    %51 = vector.extract_strided_slice %18 {offsets = [16, 0], sizes = [8, 128], strides = [1, 1]} : vector<64x128xf32> to vector<8x128xf32>
    %cst_15 = arith.constant dense<0.000000e+00> : vector<8x128xf32>
    %52 = tpu.matmul %50, %3, %cst_15 {dimension_numbers = #tpu.dot_dimension_numbers<[1], [0], [0], [1], [0, 0, 1, 1], [], []>} : vector<8x32xf32>, vector<32x128xf32>, vector<8x128xf32> -> vector<8x128xf32>
    %53 = arith.addf %51, %52 : vector<8x128xf32>
    %54 = arith.negf %53 : vector<8x128xf32>
    %55 = math.exp %54 : vector<8x128xf32>
    %cst_16 = arith.constant 1.000000e+00 : f32
    %56 = vector.broadcast %cst_16 : f32 to vector<8x128xf32>
    %57 = arith.addf %56, %55 : vector<8x128xf32>
    %58 = arith.divf %56, %57 : vector<8x128xf32>
    %59 = math.tanh %53 : vector<8x128xf32>
    %60 = vector.extract_strided_slice %58 {offsets = [0, 0], sizes = [8, 32], strides = [1, 1]} : vector<8x128xf32> to vector<8x32xf32>
    %61 = vector.extract_strided_slice %58 {offsets = [0, 32], sizes = [8, 32], strides = [1, 1]} : vector<8x128xf32> to vector<8x32xf32>
    %62 = vector.extract_strided_slice %58 {offsets = [0, 96], sizes = [8, 32], strides = [1, 1]} : vector<8x128xf32> to vector<8x32xf32>
    %63 = vector.extract_strided_slice %59 {offsets = [0, 64], sizes = [8, 32], strides = [1, 1]} : vector<8x128xf32> to vector<8x32xf32>
    %64 = arith.mulf %61, %48 : vector<8x32xf32>
    %65 = arith.mulf %60, %63 : vector<8x32xf32>
    %66 = arith.addf %64, %65 : vector<8x32xf32>
    %67 = math.tanh %66 : vector<8x32xf32>
    %68 = arith.mulf %62, %67 : vector<8x32xf32>
    %69 = vector.extract_strided_slice %18 {offsets = [24, 0], sizes = [8, 128], strides = [1, 1]} : vector<64x128xf32> to vector<8x128xf32>
    %cst_17 = arith.constant dense<0.000000e+00> : vector<8x128xf32>
    %70 = tpu.matmul %68, %3, %cst_17 {dimension_numbers = #tpu.dot_dimension_numbers<[1], [0], [0], [1], [0, 0, 1, 1], [], []>} : vector<8x32xf32>, vector<32x128xf32>, vector<8x128xf32> -> vector<8x128xf32>
    %71 = arith.addf %69, %70 : vector<8x128xf32>
    %72 = arith.negf %71 : vector<8x128xf32>
    %73 = math.exp %72 : vector<8x128xf32>
    %cst_18 = arith.constant 1.000000e+00 : f32
    %74 = vector.broadcast %cst_18 : f32 to vector<8x128xf32>
    %75 = arith.addf %74, %73 : vector<8x128xf32>
    %76 = arith.divf %74, %75 : vector<8x128xf32>
    %77 = math.tanh %71 : vector<8x128xf32>
    %78 = vector.extract_strided_slice %76 {offsets = [0, 0], sizes = [8, 32], strides = [1, 1]} : vector<8x128xf32> to vector<8x32xf32>
    %79 = vector.extract_strided_slice %76 {offsets = [0, 32], sizes = [8, 32], strides = [1, 1]} : vector<8x128xf32> to vector<8x32xf32>
    %80 = vector.extract_strided_slice %76 {offsets = [0, 96], sizes = [8, 32], strides = [1, 1]} : vector<8x128xf32> to vector<8x32xf32>
    %81 = vector.extract_strided_slice %77 {offsets = [0, 64], sizes = [8, 32], strides = [1, 1]} : vector<8x128xf32> to vector<8x32xf32>
    %82 = arith.mulf %79, %66 : vector<8x32xf32>
    %83 = arith.mulf %78, %81 : vector<8x32xf32>
    %84 = arith.addf %82, %83 : vector<8x32xf32>
    %85 = math.tanh %84 : vector<8x32xf32>
    %86 = arith.mulf %80, %85 : vector<8x32xf32>
    %87 = vector.extract_strided_slice %18 {offsets = [32, 0], sizes = [8, 128], strides = [1, 1]} : vector<64x128xf32> to vector<8x128xf32>
    %cst_19 = arith.constant dense<0.000000e+00> : vector<8x128xf32>
    %88 = tpu.matmul %86, %3, %cst_19 {dimension_numbers = #tpu.dot_dimension_numbers<[1], [0], [0], [1], [0, 0, 1, 1], [], []>} : vector<8x32xf32>, vector<32x128xf32>, vector<8x128xf32> -> vector<8x128xf32>
    %89 = arith.addf %87, %88 : vector<8x128xf32>
    %90 = arith.negf %89 : vector<8x128xf32>
    %91 = math.exp %90 : vector<8x128xf32>
    %cst_20 = arith.constant 1.000000e+00 : f32
    %92 = vector.broadcast %cst_20 : f32 to vector<8x128xf32>
    %93 = arith.addf %92, %91 : vector<8x128xf32>
    %94 = arith.divf %92, %93 : vector<8x128xf32>
    %95 = math.tanh %89 : vector<8x128xf32>
    %96 = vector.extract_strided_slice %94 {offsets = [0, 0], sizes = [8, 32], strides = [1, 1]} : vector<8x128xf32> to vector<8x32xf32>
    %97 = vector.extract_strided_slice %94 {offsets = [0, 32], sizes = [8, 32], strides = [1, 1]} : vector<8x128xf32> to vector<8x32xf32>
    %98 = vector.extract_strided_slice %94 {offsets = [0, 96], sizes = [8, 32], strides = [1, 1]} : vector<8x128xf32> to vector<8x32xf32>
    %99 = vector.extract_strided_slice %95 {offsets = [0, 64], sizes = [8, 32], strides = [1, 1]} : vector<8x128xf32> to vector<8x32xf32>
    %100 = arith.mulf %97, %84 : vector<8x32xf32>
    %101 = arith.mulf %96, %99 : vector<8x32xf32>
    %102 = arith.addf %100, %101 : vector<8x32xf32>
    %103 = math.tanh %102 : vector<8x32xf32>
    %104 = arith.mulf %98, %103 : vector<8x32xf32>
    %105 = vector.extract_strided_slice %18 {offsets = [40, 0], sizes = [8, 128], strides = [1, 1]} : vector<64x128xf32> to vector<8x128xf32>
    %cst_21 = arith.constant dense<0.000000e+00> : vector<8x128xf32>
    %106 = tpu.matmul %104, %3, %cst_21 {dimension_numbers = #tpu.dot_dimension_numbers<[1], [0], [0], [1], [0, 0, 1, 1], [], []>} : vector<8x32xf32>, vector<32x128xf32>, vector<8x128xf32> -> vector<8x128xf32>
    %107 = arith.addf %105, %106 : vector<8x128xf32>
    %108 = arith.negf %107 : vector<8x128xf32>
    %109 = math.exp %108 : vector<8x128xf32>
    %cst_22 = arith.constant 1.000000e+00 : f32
    %110 = vector.broadcast %cst_22 : f32 to vector<8x128xf32>
    %111 = arith.addf %110, %109 : vector<8x128xf32>
    %112 = arith.divf %110, %111 : vector<8x128xf32>
    %113 = math.tanh %107 : vector<8x128xf32>
    %114 = vector.extract_strided_slice %112 {offsets = [0, 0], sizes = [8, 32], strides = [1, 1]} : vector<8x128xf32> to vector<8x32xf32>
    %115 = vector.extract_strided_slice %112 {offsets = [0, 32], sizes = [8, 32], strides = [1, 1]} : vector<8x128xf32> to vector<8x32xf32>
    %116 = vector.extract_strided_slice %112 {offsets = [0, 96], sizes = [8, 32], strides = [1, 1]} : vector<8x128xf32> to vector<8x32xf32>
    %117 = vector.extract_strided_slice %113 {offsets = [0, 64], sizes = [8, 32], strides = [1, 1]} : vector<8x128xf32> to vector<8x32xf32>
    %118 = arith.mulf %115, %102 : vector<8x32xf32>
    %119 = arith.mulf %114, %117 : vector<8x32xf32>
    %120 = arith.addf %118, %119 : vector<8x32xf32>
    %121 = math.tanh %120 : vector<8x32xf32>
    %122 = arith.mulf %116, %121 : vector<8x32xf32>
    %123 = vector.extract_strided_slice %18 {offsets = [48, 0], sizes = [8, 128], strides = [1, 1]} : vector<64x128xf32> to vector<8x128xf32>
    %cst_23 = arith.constant dense<0.000000e+00> : vector<8x128xf32>
    %124 = tpu.matmul %122, %3, %cst_23 {dimension_numbers = #tpu.dot_dimension_numbers<[1], [0], [0], [1], [0, 0, 1, 1], [], []>} : vector<8x32xf32>, vector<32x128xf32>, vector<8x128xf32> -> vector<8x128xf32>
    %125 = arith.addf %123, %124 : vector<8x128xf32>
    %126 = arith.negf %125 : vector<8x128xf32>
    %127 = math.exp %126 : vector<8x128xf32>
    %cst_24 = arith.constant 1.000000e+00 : f32
    %128 = vector.broadcast %cst_24 : f32 to vector<8x128xf32>
    %129 = arith.addf %128, %127 : vector<8x128xf32>
    %130 = arith.divf %128, %129 : vector<8x128xf32>
    %131 = math.tanh %125 : vector<8x128xf32>
    %132 = vector.extract_strided_slice %130 {offsets = [0, 0], sizes = [8, 32], strides = [1, 1]} : vector<8x128xf32> to vector<8x32xf32>
    %133 = vector.extract_strided_slice %130 {offsets = [0, 32], sizes = [8, 32], strides = [1, 1]} : vector<8x128xf32> to vector<8x32xf32>
    %134 = vector.extract_strided_slice %130 {offsets = [0, 96], sizes = [8, 32], strides = [1, 1]} : vector<8x128xf32> to vector<8x32xf32>
    %135 = vector.extract_strided_slice %131 {offsets = [0, 64], sizes = [8, 32], strides = [1, 1]} : vector<8x128xf32> to vector<8x32xf32>
    %136 = arith.mulf %133, %120 : vector<8x32xf32>
    %137 = arith.mulf %132, %135 : vector<8x32xf32>
    %138 = arith.addf %136, %137 : vector<8x32xf32>
    %139 = math.tanh %138 : vector<8x32xf32>
    %140 = arith.mulf %134, %139 : vector<8x32xf32>
    %c2_i32 = arith.constant 2 : i32
    %141 = vector.broadcast %c2_i32 : i32 to vector<8x1xi32>
    %142 = arith.cmpi slt, %19, %141 : vector<8x1xi32>
    %143 = vector.shape_cast %142 : vector<8x1xi1> to vector<8x1xi1>
    %144 = vector.broadcast %143 : vector<8x1xi1> to vector<8x32xi1>
    %145 = arith.select %144, %140, %122 : vector<8x32xi1>, vector<8x32xf32>
    %146 = vector.shape_cast %142 : vector<8x1xi1> to vector<8x1xi1>
    %147 = vector.broadcast %146 : vector<8x1xi1> to vector<8x32xi1>
    %148 = arith.select %147, %138, %120 : vector<8x32xi1>, vector<8x32xf32>
    %149 = vector.extract_strided_slice %18 {offsets = [56, 0], sizes = [8, 128], strides = [1, 1]} : vector<64x128xf32> to vector<8x128xf32>
    %cst_25 = arith.constant dense<0.000000e+00> : vector<8x128xf32>
    %150 = tpu.matmul %145, %3, %cst_25 {dimension_numbers = #tpu.dot_dimension_numbers<[1], [0], [0], [1], [0, 0, 1, 1], [], []>} : vector<8x32xf32>, vector<32x128xf32>, vector<8x128xf32> -> vector<8x128xf32>
    %151 = arith.addf %149, %150 : vector<8x128xf32>
    %152 = arith.negf %151 : vector<8x128xf32>
    %153 = math.exp %152 : vector<8x128xf32>
    %cst_26 = arith.constant 1.000000e+00 : f32
    %154 = vector.broadcast %cst_26 : f32 to vector<8x128xf32>
    %155 = arith.addf %154, %153 : vector<8x128xf32>
    %156 = arith.divf %154, %155 : vector<8x128xf32>
    %157 = math.tanh %151 : vector<8x128xf32>
    %158 = vector.extract_strided_slice %156 {offsets = [0, 0], sizes = [8, 32], strides = [1, 1]} : vector<8x128xf32> to vector<8x32xf32>
    %159 = vector.extract_strided_slice %156 {offsets = [0, 32], sizes = [8, 32], strides = [1, 1]} : vector<8x128xf32> to vector<8x32xf32>
    %160 = vector.extract_strided_slice %157 {offsets = [0, 64], sizes = [8, 32], strides = [1, 1]} : vector<8x128xf32> to vector<8x32xf32>
    %161 = arith.mulf %159, %148 : vector<8x32xf32>
    %162 = arith.mulf %158, %160 : vector<8x32xf32>
    %163 = arith.addf %161, %162 : vector<8x32xf32>
    %c2_i32_27 = arith.constant 2 : i32
    %164 = vector.broadcast %c2_i32_27 : i32 to vector<8x1xi32>
    %165 = arith.cmpi slt, %19, %164 : vector<8x1xi32>
    %166 = vector.shape_cast %165 : vector<8x1xi1> to vector<8x1xi1>
    %167 = vector.broadcast %166 : vector<8x1xi1> to vector<8x32xi1>
    %168 = arith.select %167, %163, %148 : vector<8x32xi1>, vector<8x32xf32>
    %cst_28 = arith.constant dense<0.000000e+00> : vector<8x128xf32>
    %169 = tpu.matmul %168, %2, %cst_28 {dimension_numbers = #tpu.dot_dimension_numbers<[1], [0], [0], [1], [0, 0, 1, 1], [], []>} : vector<8x32xf32>, vector<32x128xf32>, vector<8x128xf32> -> vector<8x128xf32>
    %170 = vector.broadcast %7 : vector<1x128xf32> to vector<8x128xf32>
    %171 = arith.addf %169, %170 : vector<8x128xf32>
    %172 = vector.extract_strided_slice %171 {offsets = [0, 0], sizes = [2, 128], strides = [1, 1]} : vector<8x128xf32> to vector<2x128xf32>
    %173 = arith.negf %172 : vector<2x128xf32>
    %174 = math.exp %173 : vector<2x128xf32>
    %cst_29 = arith.constant 1.000000e+00 : f32
    %175 = vector.broadcast %cst_29 : f32 to vector<2x128xf32>
    %176 = arith.addf %175, %174 : vector<2x128xf32>
    %177 = arith.divf %175, %176 : vector<2x128xf32>
    %178 = math.tanh %172 : vector<2x128xf32>
    %179 = vector.extract_strided_slice %177 {offsets = [0, 0], sizes = [2, 32], strides = [1, 1]} : vector<2x128xf32> to vector<2x32xf32>
    %180 = vector.extract_strided_slice %177 {offsets = [0, 96], sizes = [2, 32], strides = [1, 1]} : vector<2x128xf32> to vector<2x32xf32>
    %181 = vector.extract_strided_slice %178 {offsets = [0, 64], sizes = [2, 32], strides = [1, 1]} : vector<2x128xf32> to vector<2x32xf32>
    %182 = arith.mulf %179, %181 : vector<2x32xf32>
    %183 = math.tanh %182 : vector<2x32xf32>
    %184 = arith.mulf %180, %183 : vector<2x32xf32>
    %185 = vector.extract_strided_slice %171 {offsets = [2, 0], sizes = [2, 128], strides = [1, 1]} : vector<8x128xf32> to vector<2x128xf32>
    %cst_30 = arith.constant dense<0.000000e+00> : vector<2x128xf32>
    %186 = tpu.matmul %184, %3, %cst_30 {dimension_numbers = #tpu.dot_dimension_numbers<[1], [0], [0], [1], [0, 0, 1, 1], [], []>} : vector<2x32xf32>, vector<32x128xf32>, vector<2x128xf32> -> vector<2x128xf32>
    %187 = arith.addf %185, %186 : vector<2x128xf32>
    %188 = arith.negf %187 : vector<2x128xf32>
    %189 = math.exp %188 : vector<2x128xf32>
    %cst_31 = arith.constant 1.000000e+00 : f32
    %190 = vector.broadcast %cst_31 : f32 to vector<2x128xf32>
    %191 = arith.addf %190, %189 : vector<2x128xf32>
    %192 = arith.divf %190, %191 : vector<2x128xf32>
    %193 = math.tanh %187 : vector<2x128xf32>
    %194 = vector.extract_strided_slice %192 {offsets = [0, 0], sizes = [2, 32], strides = [1, 1]} : vector<2x128xf32> to vector<2x32xf32>
    %195 = vector.extract_strided_slice %192 {offsets = [0, 32], sizes = [2, 32], strides = [1, 1]} : vector<2x128xf32> to vector<2x32xf32>
    %196 = vector.extract_strided_slice %192 {offsets = [0, 96], sizes = [2, 32], strides = [1, 1]} : vector<2x128xf32> to vector<2x32xf32>
    %197 = vector.extract_strided_slice %193 {offsets = [0, 64], sizes = [2, 32], strides = [1, 1]} : vector<2x128xf32> to vector<2x32xf32>
    %198 = arith.mulf %195, %182 : vector<2x32xf32>
    %199 = arith.mulf %194, %197 : vector<2x32xf32>
    %200 = arith.addf %198, %199 : vector<2x32xf32>
    %201 = math.tanh %200 : vector<2x32xf32>
    %202 = arith.mulf %196, %201 : vector<2x32xf32>
    %203 = vector.shape_cast %8 : vector<1x128xf32> to vector<1x128xf32>
    %204 = vector.broadcast %203 : vector<1x128xf32> to vector<2x128xf32>
    %cst_32 = arith.constant dense<0.000000e+00> : vector<2x128xf32>
    %205 = tpu.matmul %184, %5, %cst_32 {dimension_numbers = #tpu.dot_dimension_numbers<[1], [0], [0], [1], [0, 0, 1, 1], [], []>} : vector<2x32xf32>, vector<32x128xf32>, vector<2x128xf32> -> vector<2x128xf32>
    %206 = arith.addf %205, %204 : vector<2x128xf32>
    %207 = arith.negf %206 : vector<2x128xf32>
    %208 = math.exp %207 : vector<2x128xf32>
    %cst_33 = arith.constant 1.000000e+00 : f32
    %209 = vector.broadcast %cst_33 : f32 to vector<2x128xf32>
    %210 = arith.addf %209, %208 : vector<2x128xf32>
    %211 = arith.divf %209, %210 : vector<2x128xf32>
    %212 = math.tanh %206 : vector<2x128xf32>
    %213 = vector.extract_strided_slice %211 {offsets = [0, 0], sizes = [2, 32], strides = [1, 1]} : vector<2x128xf32> to vector<2x32xf32>
    %214 = vector.extract_strided_slice %211 {offsets = [0, 96], sizes = [2, 32], strides = [1, 1]} : vector<2x128xf32> to vector<2x32xf32>
    %215 = vector.extract_strided_slice %212 {offsets = [0, 64], sizes = [2, 32], strides = [1, 1]} : vector<2x128xf32> to vector<2x32xf32>
    %216 = arith.mulf %213, %215 : vector<2x32xf32>
    %217 = math.tanh %216 : vector<2x32xf32>
    %218 = arith.mulf %214, %217 : vector<2x32xf32>
    %cst_34 = arith.constant dense<0.000000e+00> : vector<2x128xf32>
    %219 = tpu.matmul %202, %5, %cst_34 {dimension_numbers = #tpu.dot_dimension_numbers<[1], [0], [0], [1], [0, 0, 1, 1], [], []>} : vector<2x32xf32>, vector<32x128xf32>, vector<2x128xf32> -> vector<2x128xf32>
    %220 = arith.addf %219, %204 : vector<2x128xf32>
    %cst_35 = arith.constant dense<0.000000e+00> : vector<2x128xf32>
    %221 = tpu.matmul %218, %6, %cst_35 {dimension_numbers = #tpu.dot_dimension_numbers<[1], [0], [0], [1], [0, 0, 1, 1], [], []>} : vector<2x32xf32>, vector<32x128xf32>, vector<2x128xf32> -> vector<2x128xf32>
    %222 = arith.addf %220, %221 : vector<2x128xf32>
    %223 = arith.negf %222 : vector<2x128xf32>
    %224 = math.exp %223 : vector<2x128xf32>
    %cst_36 = arith.constant 1.000000e+00 : f32
    %225 = vector.broadcast %cst_36 : f32 to vector<2x128xf32>
    %226 = arith.addf %225, %224 : vector<2x128xf32>
    %227 = arith.divf %225, %226 : vector<2x128xf32>
    %228 = math.tanh %222 : vector<2x128xf32>
    %229 = vector.extract_strided_slice %227 {offsets = [0, 0], sizes = [2, 32], strides = [1, 1]} : vector<2x128xf32> to vector<2x32xf32>
    %230 = vector.extract_strided_slice %227 {offsets = [0, 32], sizes = [2, 32], strides = [1, 1]} : vector<2x128xf32> to vector<2x32xf32>
    %231 = vector.extract_strided_slice %228 {offsets = [0, 64], sizes = [2, 32], strides = [1, 1]} : vector<2x128xf32> to vector<2x32xf32>
    %232 = arith.mulf %230, %216 : vector<2x32xf32>
    %233 = arith.mulf %229, %231 : vector<2x32xf32>
    %234 = arith.addf %232, %233 : vector<2x32xf32>
    %c0_37 = arith.constant 0 : index
    %c0_38 = arith.constant 0 : index
    %235 = vector.load %arg7[%c0_37, %c0_38] : memref<32x2xf32, #tpu.memory_space<vmem>>, vector<32x2xf32>
    %cst_39 = arith.constant dense<0.000000e+00> : vector<2x2xf32>
    %236 = tpu.matmul %234, %235, %cst_39 {dimension_numbers = #tpu.dot_dimension_numbers<[1], [0], [0], [1], [0, 0, 1, 1], [], []>} : vector<2x32xf32>, vector<32x2xf32>, vector<2x2xf32> -> vector<2x2xf32>
    %c0_40 = arith.constant 0 : index
    %c0_41 = arith.constant 0 : index
    %237 = vector.load %arg8[%c0_40, %c0_41] : memref<1x2xf32, #tpu.memory_space<vmem>>, vector<1x2xf32>
    %238 = vector.broadcast %237 : vector<1x2xf32> to vector<2x2xf32>
    %239 = arith.addf %236, %238 : vector<2x2xf32>
    %240 = arith.negf %239 : vector<2x2xf32>
    %241 = math.exp %240 : vector<2x2xf32>
    %cst_42 = arith.constant 1.000000e+00 : f32
    %242 = vector.broadcast %cst_42 : f32 to vector<2x2xf32>
    %243 = arith.addf %242, %241 : vector<2x2xf32>
    %244 = arith.divf %242, %243 : vector<2x2xf32>
    %c0_43 = arith.constant 0 : index
    %c0_44 = arith.constant 0 : index
    %245 = vector.load %arg9[%c0_43, %c0_44] : memref<2x2xf32, #tpu.memory_space<vmem>>, vector<2x2xf32>
    tpu.vector_store %arg9[%c0_43, %c0_44], %244 {strides = array<i32>} : memref<2x2xf32, #tpu.memory_space<vmem>>, vector<2x2xf32>,
    return
  }
  func.func @transform_0(%arg0: i32) -> (i32, i32) {
    %c0_i32 = arith.constant 0 : i32
    %c0_i32_0 = arith.constant 0 : i32
    %c0_i32_1 = arith.constant 0 : i32
    return %c0_i32, %c0_i32_0 : i32, i32
  }
  func.func @transform_1(%arg0: i32) -> (i32, i32) {
    %c0_i32 = arith.constant 0 : i32
    %c0_i32_0 = arith.constant 0 : i32
    %c0_i32_1 = arith.constant 0 : i32
    return %c0_i32, %c0_i32_0 : i32, i32
  }
  func.func @transform_2(%arg0: i32) -> (i32, i32) {
    %c0_i32 = arith.constant 0 : i32
    %c0_i32_0 = arith.constant 0 : i32
    %c0_i32_1 = arith.constant 0 : i32
    return %c0_i32, %c0_i32_0 : i32, i32
  }
  func.func @transform_3(%arg0: i32) -> (i32, i32) {
    %c0_i32 = arith.constant 0 : i32
    %c0_i32_0 = arith.constant 0 : i32
    %c0_i32_1 = arith.constant 0 : i32
    return %c0_i32, %c0_i32_0 : i32, i32
  }
  func.func @transform_4(%arg0: i32) -> (i32, i32) {
    %c0_i32 = arith.constant 0 : i32
    %c0_i32_0 = arith.constant 0 : i32
    %c0_i32_1 = arith.constant 0 : i32
    return %c0_i32, %c0_i32_0 : i32, i32
  }
  func.func @transform_5(%arg0: i32) -> (i32, i32) {
    %c0_i32 = arith.constant 0 : i32
    %c0_i32_0 = arith.constant 0 : i32
    %c0_i32_1 = arith.constant 0 : i32
    return %c0_i32, %c0_i32_0 : i32, i32
  }
  func.func @transform_6(%arg0: i32) -> (i32, i32) {
    %c0_i32 = arith.constant 0 : i32
    %c0_i32_0 = arith.constant 0 : i32
    %c0_i32_1 = arith.constant 0 : i32
    return %c0_i32, %c0_i32_0 : i32, i32
  }
  func.func @transform_7(%arg0: i32) -> (i32, i32) {
    %c0_i32 = arith.constant 0 : i32
    %c0_i32_0 = arith.constant 0 : i32
    %c0_i32_1 = arith.constant 0 : i32
    return %c0_i32, %c0_i32_0 : i32, i32
  }
  func.func @transform_8(%arg0: i32) -> (i32, i32) {
    %c0_i32 = arith.constant 0 : i32
    %c0_i32_0 = arith.constant 0 : i32
    %c0_i32_1 = arith.constant 0 : i32
    return %c0_i32, %c0_i32_0 : i32, i32
  }
}

</mosaic_0001>

<bundles_post_ra>
// kernel: hierarchical_encoder_forward.1
= control target key start
LH: loop header
LB: loop body
LE: loop exit
PB: predicated region body
PF: predicated region fallthrough
CT: control target
= control target key end

     0   :  { %13 = vsyncpa [#allocation3], 0  ;;  %s1603_s0 = inlined_call_operand.vmem [shape: s32[64,1], index: 0, kind: input, shape index: {}]   ;;  %s1604_s1 = inlined_call_operand.vmem [shape: f32[24,32], index: 1, kind: input, shape index: {}]   ;;  %s1605_s2 = inlined_call_operand.vmem [shape: f32[64,128], index: 2, kind: input, shape index: {}]   ;;  %s1606_s3 = inlined_call_operand.vmem [shape: f32[1,128], index: 3, kind: input, shape index: {}]   ;;  %s1607_s4 = inlined_call_operand.hbm [shape: f32[64,128], index: 4, kind: input, shape index: {}]   ;;  %s1608_s5 = inlined_call_operand.vmem [shape: f32[1,128], index: 5, kind: input, shape index: {}]   ;;  %s1609_s6 = inlined_call_operand.vmem [shape: f32[32,2], index: 6, kind: input, shape index: {}]   ;;  %s1610_s7 = inlined_call_operand.vmem [shape: f32[1,2], index: 7, kind: input, shape index: {}]   ;;  %s1611_s8 = inlined_call_operand.hbm [shape: f32[2,2], index: 8, kind: output, shape index: {}]  }
   0x1   :  { %14 = vsyncpa [#allocation4], 0  ;;  %s27_s29 = sshll.u32 %s1607_s4, 4  ;;  %s1290_s30 = smov [#allocation2]   ;;  %s28_s29 = int_to_ptr.hbm [resolvable:$true] %s27_s29 }
   0x2   :  { %s29_s9 = sshll.u32 %s1290_s30, 4  ;;  %s1291_s10 = smov 128   ;;  %s30_s9 = int_to_ptr.vmem [resolvable:$true] %s29_s9 }
   0x3   :  { %s1292_s11 = smov 8  }
   0x4   :  { %35 = dma.hbm_to_vmem [thread:$0]  %s28_s29, 1024, %s30_s9, [#allocation3], %s1291_s10, %s1291_s10, %s1292_s11  }
   0x5   :  { %1286 = dma.done.wait [#allocation3], 1024  }
   0x6   :  { %1287 = vsyncadd [#allocation3], 4294966272  ;;  %v1293_v0 = vmov 0   ;;  %v69_v1 = vld [vmem:[%s1603_s0] sm:$0xff]  ;;  %v48_v2 = vld [vmem:[%s1604_s1 + $0x10] sm:$0xff]  ;;  %v67_v10 = vlaneseq  ;;  %vm125_vm0 = vcmask 195584  }
   0x7   :  { %1136 = vset.pattern.permute.xlu0 %v1293_v0  ;;  %1137 = vset.pattern.permute.xlu2 %v1293_v0  ;;  %v70_v3 = vld [vmem:[%s1603_s0 + $0x8] sm:$0xff]  ;;  %v71_v4 = vld [vmem:[%s1603_s0 + $0x10] sm:$0xff]  ;;  %v46_v6 = vld [vmem:[%s1604_s1] sm:$0xff]  ;;  %v1294_v13 = vmov 0.0   ;;  %vm194_vm4 = vcmask 261120   ;;  %s1295_s10 = smov 64  }
   0x8   :  { %1138 = vset.pattern.permute.xlu1 %v1293_v0  ;;  %78 = vperm.xlu0 %1136, %v69_v1   ;;  %v47_v5 = vld [vmem:[%s1604_s1 + $0x8] sm:$0xff]  ;;  %v1368_v7 = vld [vmem:[%s1605_s2 + $0x18] sm:$0xff]  ;;  %v1373_v8 = vld [vmem:[%s1605_s2 + $0x10] sm:$0xff]  ;;  %v1384_v11 = vand.u32 127, %v67_v10  ;;  %s1297_s11 = smov 32  }
   0x9   :  { %163 = vmatpush.msra.mxu0 %v48_v2  ;;  %231 = vmatpush.msra.mxu1 %v1368_v7  ;;  %v1379_v9 = vld [vmem:[%s1605_s2 + $0x8] sm:$0xff]  ;;  %v1398_v19 = vld [vmem:[%s1605_s2] sm:$0xff]  ;;  %v1416_v43 = vld [vmem:[%s1605_s2 + $0x38] sm:$0xff] }
   0xa   :  { %v1407_v23 = vld [vmem:[%s1606_s3] ss:$0 sm:$0xff]  ;;  %s1296_s3 = smov 96   ;;  %v1421_v44 = vld [vmem:[%s1605_s2 + $0x30] sm:$0xff]  ;;  %310 = vmatpush.msra.mxu2 %v1416_v43  ;;  %377 = vmatpush.msra.mxu3 %v1416_v43  ;;  %v1428_v45 = vld [vmem:[%s1605_s2 + $0x28] sm:$0xff] }
   0xb   :  { %164 = vmatpush.msra.mxu0 %v47_v5  ;;  %232 = vmatpush.msra.mxu1 %v1373_v8  ;;  %v1435_v46 = vld [vmem:[%s1605_s2 + $0x20] sm:$0xff] }
   0xc   :  { %311 = vmatpush.msra.mxu2 %v1421_v44  ;;  %378 = vmatpush.msra.mxu3 %v1421_v44 }
   0xd   :  { %165 = vmatpush.msra.mxu0 %v46_v6  ;;  %233 = vmatpush.msra.mxu1 %v1379_v9 }
   0xe   :  { %312 = vmatpush.msra.mxu2 %v1428_v45  ;;  %379 = vmatpush.msra.mxu3 %v1428_v45 }
   0xf   :  { %234 = vmatpush.msra.mxu1 %v1398_v19 }
  0x10   :  { %81 = vperm.xlu0 %1136, %v70_v3   ;;  %313 = vmatpush.msra.mxu2 %v1435_v46 }
  0x11   :  { %380 = vmatpush.msra.mxu3 %v1435_v46 }
  0x12   :  { %440 = vmatpush.msrb.mxu2 %v1416_v43 }
  0x13   :  { %503 = vmatpush.msrb.mxu3 %v1416_v43 }
  0x14   :  { %441 = vmatpush.msrb.mxu2 %v1421_v44 }
  0x15   :  { %504 = vmatpush.msrb.mxu3 %v1421_v44 }
  0x16   :  { %442 = vmatpush.msrb.mxu2 %v1428_v45 }
  0x17   :  { %505 = vmatpush.msrb.mxu3 %v1428_v45 }
  0x18   :  { %84 = vperm.xlu0 %1136, %v71_v4   ;;  %443 = vmatpush.msrb.mxu2 %v1435_v46 }
  0x19   :  { %506 = vmatpush.msrb.mxu3 %v1435_v46 }
  0x7a   :  { %v79_v12 = vpop.permute.xlu0 %78 }
  0x7b   :  { %vm101_vm1 = vcmp.eq.s32.totalorder %v1384_v11, %v79_v12 }
  0x7c   :  { %v1077_v14 = vsel %vm101_vm1, 1.0, %v1294_v13 }
  0x7d   :  { %1085 = vmatmul.msk.f32.vlgmr.msra.gmra.mxu0 %vm125_vm0, %v1077_v14 }
  0x82   :  { %v82_v15 = vpop.permute.xlu0 %81 }
  0x83   :  { %vm102_vm2 = vcmp.eq.s32.totalorder %v1384_v11, %v82_v15 }
  0x84   :  { %v1078_v16 = vsel %vm102_vm2, 1.0, %v1294_v13 }
  0x85   :  { %1086 = vmatmul.msk.f32.gmra.mxu0 %vm125_vm0, %v1078_v16 }
  0x8a   :  { %v85_v17 = vpop.permute.xlu0 %84 }
  0x8b   :  { %vm103_vm3 = vcmp.eq.s32.totalorder %v1384_v11, %v85_v17  ;;  %v72_v17 = vld [vmem:[%s1603_s0 + $0x18] sm:$0xff] }
  0x8c   :  { %v1079_v18 = vsel %vm103_vm3, 1.0, %v1294_v13 }
  0x8d   :  { %1087 = vmatmul.msk.f32.gmra.mxu0 %vm125_vm0, %v1079_v18 }
  0xfa   :  { %v167_v20 = vpop.f32.mrf.mxu0 }
  0xfb   :  { %1093 = vmatmul.msk.f32.vlgmr.msra.gmra.mxu1 %vm194_vm4, %v167_v20 }
 0x102   :  { %v170_v21 = vpop.f32.mrf.mxu0 }
 0x103   :  { %1094 = vmatmul.msk.f32.gmra.mxu1 %vm194_vm4, %v170_v21 }
 0x10a   :  { %v173_v22 = vpop.f32.mrf.mxu0 }
 0x10b   :  { %1095 = vmatmul.msk.f32.gmra.mxu1 %vm194_vm4, %v173_v22 }
 0x178   :  { %v236_v24 = vpop.f32.mrf.mxu1 }
 0x179   :  { %v237_v25 = vadd.f32 %v1407_v23, %v236_v24 }
 0x17b   :  { %1142 = vtanh.f32 %v237_v25  ;;  %v1101_v27 = vmul.f32 -1.442695, %v237_v25 }
 0x17d   :  { %1144 = vpow2.f32 %v1101_v27 }
 0x180   :  { %v239_v50 = vpop.f32.mrf.mxu1 }
 0x181   :  { %v1143_v26 = vpop.eup %1142  ;;  %v240_v51 = vadd.f32 %v1407_v23, %v239_v50 }
 0x182   :  { %283 = vrot.lane.b32.xlu1 %v1143_v26, %s1295_s10 }
 0x183   :  { %v1145_v28 = vpop.eup %1144 }
 0x184   :  { %v265_v29 = vadd.f32 1.0, %v1145_v28 }
 0x186   :  { %1146 = vrcp.f32 %v265_v29  ;;  %v277_v35 = vand.u32 2147483648, %v265_v29  ;;  %vm271_vm6 = vweird.f32 %v265_v29  ;;  %v275_v36 = vand.u32 2147483647, %v265_v29 }
 0x188   :  { %v278_v38 = vor.u32 1.1754944e-38, %v277_v35  ;;  %vm276_vm8 = vcmp.eq.f32.partialorder %v275_v36, 8.507059e+37  ;;  %v242_v26 = vpop.f32.mrf.mxu1 }
 0x189   :  { %v243_v27 = vadd.f32 %v1407_v23, %v242_v26 }
 0x18c   :  { %v1147_v30 = vpop.eup %1146 }
 0x18d   :  { %v267_v31 = vmul.f32 %v1147_v30, %v265_v29  ;;  %vm272_vm5 = vweird.f32 %v1147_v30 }
 0x18e   :  { %vm273_vm7 = vmor %vm271_vm6, %vm272_vm5 }
 0x18f   :  { %v268_v32 = vsub.f32 1.0, %v267_v31 }
 0x191   :  { %v269_v33 = vmul.f32 %v1147_v30, %v268_v32 }
 0x193   :  { %v270_v34 = vadd.f32 %v1147_v30, %v269_v33 }
 0x195   :  { %v274_v37 = vsel %vm273_vm7, %v1147_v30, %v270_v34 }
 0x196   :  { %v279_v40 = vsel %vm276_vm8, %v278_v38, %v274_v37 }
 0x1f4   :  { %v284_v39 = vpop.permute.xlu1 %283 }
 0x1f5   :  { %v286_v41 = vmul.f32 %v284_v39, %v279_v40 }
 0x1f7   :  { %1148 = vtanh.f32 %v286_v41 }
 0x1fd   :  { %v1149_v42 = vpop.eup %1148 }
 0x1fe   :  { %289 = vrot.lane.b32.xlu1 %v1149_v42, %s1296_s3 }
 0x206   :  { %340 = vrot.lane.b32.xlu1 %v286_v41, %s1297_s11 }
 0x270   :  { %v290_v47 = vpop.permute.xlu1 %289 }
 0x271   :  { %v292_v48 = vmul.f32 %v290_v47, %v279_v40 }
 0x273   :  { %294 = vrot.lane.b32.xlu2 %v292_v48, %s1297_s11 }
 0x278   :  { %v341_v6 = vpop.permute.xlu1 %340 }
 0x2cd   :  { %v295_v49 = vpop.permute.xlu2 %294 }
 0x2ce   :  { %1102 = vmatmul.msk.f32.vlgmr.msra.gmra.mxu2 %vm194_vm4, %v295_v49 }
 0x2cf   :  { %566 = vmatpush.msra.mxu2 %v1416_v43 }
 0x2d1   :  { %567 = vmatpush.msra.mxu2 %v1421_v44 }
 0x2d3   :  { %568 = vmatpush.msra.mxu2 %v1428_v45 }
 0x2d5   :  { %569 = vmatpush.msra.mxu2 %v1435_v46 }
 0x351   :  { %v315_v52 = vpop.f32.mrf.mxu2 }
 0x352   :  { %v318_v53 = vadd.f32 %v315_v52, %v240_v51 }
 0x354   :  { %1150 = vtanh.f32 %v318_v53  ;;  %v1103_v55 = vmul.f32 -1.442695, %v318_v53 }
 0x356   :  { %1152 = vpow2.f32 %v1103_v55 }
 0x35a   :  { %v1151_v54 = vpop.eup %1150 }
 0x35b   :  { %345 = vrot.lane.b32.xlu2 %v1151_v54, %s1295_s10 }
 0x35c   :  { %v1153_v56 = vpop.eup %1152 }
 0x35d   :  { %v322_v57 = vadd.f32 1.0, %v1153_v56 }
 0x35f   :  { %1154 = vrcp.f32 %v322_v57  ;;  %v334_v63 = vand.u32 2147483648, %v322_v57  ;;  %vm328_vm10 = vweird.f32 %v322_v57  ;;  %v332_v0 = vand.u32 2147483647, %v322_v57 }
 0x361   :  { %v335_v2 = vor.u32 1.1754944e-38, %v334_v63  ;;  %vm333_vm12 = vcmp.eq.f32.partialorder %v332_v0, 8.507059e+37 }
 0x365   :  { %v1155_v58 = vpop.eup %1154 }
 0x366   :  { %v324_v59 = vmul.f32 %v1155_v58, %v322_v57  ;;  %vm329_vm9 = vweird.f32 %v1155_v58 }
 0x367   :  { %vm330_vm11 = vmor %vm328_vm10, %vm329_vm9 }
 0x368   :  { %v325_v60 = vsub.f32 1.0, %v324_v59 }
 0x36a   :  { %v326_v61 = vmul.f32 %v1155_v58, %v325_v60 }
 0x36c   :  { %v327_v62 = vadd.f32 %v1155_v58, %v326_v61 }
 0x36e   :  { %v331_v1 = vsel %vm330_vm11, %v1155_v58, %v327_v62 }
 0x36f   :  { %v336_v4 = vsel %vm333_vm12, %v335_v2, %v331_v1 }
 0x370   :  { %v343_v12 = vmul.f32 %v341_v6, %v336_v4 }
 0x3b5   :  { %v346_v3 = vpop.permute.xlu2 %345 }
 0x3b6   :  { %v348_v5 = vmul.f32 %v346_v3, %v336_v4 }
 0x3b8   :  { %350 = vrot.lane.b32.xlu2 %v348_v5, %s1297_s11 }
 0x412   :  { %v351_v14 = vpop.permute.xlu2 %350 }
 0x413   :  { %v353_v15 = vadd.f32 %v351_v14, %v343_v12 }
 0x415   :  { %1156 = vtanh.f32 %v353_v15 }
 0x41b   :  { %v1157_v16 = vpop.eup %1156 }
 0x41c   :  { %356 = vrot.lane.b32.xlu0 %v1157_v16, %s1295_s10 }
 0x424   :  { %87 = vperm.xlu0 %1136, %v72_v17  }
 0x48e   :  { %v357_v18 = vpop.permute.xlu0 %356 }
 0x48f   :  { %v359_v20 = vmul.f32 %v357_v18, %v336_v4 }
 0x491   :  { %361 = vrot.lane.b32.xlu1 %v359_v20, %s1297_s11  ;;  %v73_v20 = vld [vmem:[%s1603_s0 + $0x20] sm:$0xff] }
 0x496   :  { %v88_v21 = vpop.permute.xlu0 %87 }
 0x497   :  { %vm104_vm13 = vcmp.eq.s32.totalorder %v1384_v11, %v88_v21 }
 0x498   :  { %v1080_v22 = vsel %vm104_vm13, 1.0, %v1294_v13 }
 0x499   :  { %1088 = vmatmul.msk.f32.gmra.mxu0 %vm125_vm0, %v1080_v22 }
 0x503   :  { %v362_v24 = vpop.permute.xlu1 %361 }
 0x504   :  { %1104 = vmatmul.msk.f32.vlgmr.msra.gmra.mxu3 %vm194_vm4, %v362_v24 }
 0x505   :  { %629 = vmatpush.msra.mxu3 %v1416_v43 }
 0x507   :  { %630 = vmatpush.msra.mxu3 %v1421_v44 }
 0x509   :  { %631 = vmatpush.msra.mxu3 %v1428_v45 }
 0x50b   :  { %632 = vmatpush.msra.mxu3 %v1435_v46 }
 0x516   :  { %v176_v25 = vpop.f32.mrf.mxu0 }
 0x517   :  { %1096 = vmatmul.msk.f32.gmra.mxu1 %vm194_vm4, %v176_v25 }
 0x587   :  { %v382_v28 = vpop.f32.mrf.mxu3 }
 0x588   :  { %v385_v29 = vadd.f32 %v382_v28, %v243_v27 }
 0x58a   :  { %1158 = vtanh.f32 %v385_v29  ;;  %v1105_v31 = vmul.f32 -1.442695, %v385_v29 }
 0x58c   :  { %1160 = vpow2.f32 %v1105_v31 }
 0x590   :  { %v1159_v30 = vpop.eup %1158 }
 0x591   :  { %408 = vrot.lane.b32.xlu2 %v1159_v30, %s1295_s10 }
 0x592   :  { %v1161_v32 = vpop.eup %1160 }
 0x593   :  { %v389_v33 = vadd.f32 1.0, %v1161_v32 }
 0x594   :  { %v245_v57 = vpop.f32.mrf.mxu1 }
 0x595   :  { %1162 = vrcp.f32 %v389_v33  ;;  %v401_v39 = vand.u32 2147483648, %v389_v33  ;;  %vm395_vm15 = vweird.f32 %v389_v33  ;;  %v399_v40 = vand.u32 2147483647, %v389_v33 }
 0x596   :  { %v246_v58 = vadd.f32 %v1407_v23, %v245_v57  ;;  %v75_v57 = vld [vmem:[%s1603_s0 + $0x30] sm:$0xff] }
 0x597   :  { %v402_v42 = vor.u32 1.1754944e-38, %v401_v39  ;;  %vm400_vm2 = vcmp.eq.f32.partialorder %v399_v40, 8.507059e+37 }
 0x59b   :  { %v1163_v34 = vpop.eup %1162 }
 0x59c   :  { %v391_v35 = vmul.f32 %v1163_v34, %v389_v33  ;;  %vm396_vm14 = vweird.f32 %v1163_v34 }
 0x59d   :  { %vm397_vm1 = vmor %vm395_vm15, %vm396_vm14 }
 0x59e   :  { %v392_v36 = vsub.f32 1.0, %v391_v35 }
 0x5a0   :  { %v393_v37 = vmul.f32 %v1163_v34, %v392_v36 }
 0x5a2   :  { %v394_v38 = vadd.f32 %v1163_v34, %v393_v37 }
 0x5a4   :  { %v398_v41 = vsel %vm397_vm1, %v1163_v34, %v394_v38 }
 0x5a5   :  { %v403_v48 = vsel %vm400_vm2, %v402_v42, %v398_v41 }
 0x5a6   :  { %v406_v50 = vmul.f32 %v403_v48, %v353_v15 }
 0x5eb   :  { %v409_v47 = vpop.permute.xlu2 %408 }
 0x5ec   :  { %v411_v49 = vmul.f32 %v409_v47, %v403_v48 }
 0x5ee   :  { %413 = vrot.lane.b32.xlu1 %v411_v49, %s1297_s11 }
 0x660   :  { %v414_v51 = vpop.permute.xlu1 %413 }
 0x661   :  { %v416_v52 = vadd.f32 %v414_v51, %v406_v50 }
 0x663   :  { %1164 = vtanh.f32 %v416_v52 }
 0x669   :  { %v1165_v53 = vpop.eup %1164 }
 0x66a   :  { %419 = vrot.lane.b32.xlu2 %v1165_v53, %s1295_s10 }
 0x672   :  { %90 = vperm.xlu2 %1137, %v73_v20  }
 0x6c4   :  { %v420_v54 = vpop.permute.xlu2 %419 }
 0x6c5   :  { %v422_v55 = vmul.f32 %v420_v54, %v403_v48 }
 0x6c7   :  { %424 = vrot.lane.b32.xlu0 %v422_v55, %s1297_s11 }
 0x6cc   :  { %v91_v26 = vpop.permute.xlu2 %90 }
 0x6cd   :  { %vm105_vm8 = vcmp.eq.s32.totalorder %v1384_v11, %v91_v26 }
 0x6ce   :  { %v1081_v27 = vsel %vm105_vm8, 1.0, %v1294_v13 }
 0x6cf   :  { %1089 = vmatmul.msk.f32.gmra.mxu0 %vm125_vm0, %v1081_v27 }
 0x739   :  { %v425_v56 = vpop.permute.xlu0 %424 }
 0x73a   :  { %1106 = vmatmul.msk.f32.vlgmr.msrb.gmra.mxu2 %vm194_vm4, %v425_v56 }
 0x73b   :  { %697 = vmatpush.msrb.mxu2 %v1416_v43 }
 0x73d   :  { %698 = vmatpush.msrb.mxu2 %v1421_v44 }
 0x73f   :  { %699 = vmatpush.msrb.mxu2 %v1428_v45 }
 0x741   :  { %700 = vmatpush.msrb.mxu2 %v1435_v46 }
 0x74c   :  { %v179_v30 = vpop.f32.mrf.mxu0 }
 0x74d   :  { %1097 = vmatmul.msk.f32.gmra.mxu1 %vm194_vm4, %v179_v30 }
 0x7bd   :  { %v445_v59 = vpop.f32.mrf.mxu2 }
 0x7be   :  { %v448_v60 = vadd.f32 %v445_v59, %v246_v58 }
 0x7c0   :  { %1166 = vtanh.f32 %v448_v60  ;;  %v1107_v62 = vmul.f32 -1.442695, %v448_v60 }
 0x7c2   :  { %1168 = vpow2.f32 %v1107_v62 }
 0x7c6   :  { %v1167_v61 = vpop.eup %1166 }
 0x7c7   :  { %471 = vrot.lane.b32.xlu1 %v1167_v61, %s1295_s10 }
 0x7c8   :  { %v1169_v63 = vpop.eup %1168 }
 0x7c9   :  { %v452_v0 = vadd.f32 1.0, %v1169_v63 }
 0x7ca   :  { %v248_v32 = vpop.f32.mrf.mxu1 }
 0x7cb   :  { %1170 = vrcp.f32 %v452_v0  ;;  %v464_v6 = vand.u32 2147483648, %v452_v0  ;;  %vm458_vm5 = vweird.f32 %v452_v0  ;;  %v462_v12 = vand.u32 2147483647, %v452_v0 }
 0x7cc   :  { %v249_v33 = vadd.f32 %v1407_v23, %v248_v32 }
 0x7cd   :  { %v465_v15 = vor.u32 1.1754944e-38, %v464_v6  ;;  %vm463_vm7 = vcmp.eq.f32.partialorder %v462_v12, 8.507059e+37 }
 0x7d1   :  { %v1171_v1 = vpop.eup %1170 }
 0x7d2   :  { %v454_v2 = vmul.f32 %v1171_v1, %v452_v0  ;;  %vm459_vm3 = vweird.f32 %v1171_v1 }
 0x7d3   :  { %vm460_vm6 = vmor %vm458_vm5, %vm459_vm3 }
 0x7d4   :  { %v455_v3 = vsub.f32 1.0, %v454_v2 }
 0x7d6   :  { %v456_v4 = vmul.f32 %v1171_v1, %v455_v3 }
 0x7d8   :  { %v457_v5 = vadd.f32 %v1171_v1, %v456_v4 }
 0x7da   :  { %v461_v14 = vsel %vm460_vm6, %v1171_v1, %v457_v5 }
 0x7db   :  { %v466_v17 = vsel %vm463_vm7, %v465_v15, %v461_v14 }
 0x7dc   :  { %v469_v21 = vmul.f32 %v466_v17, %v416_v52  ;;  %v74_v52 = vld [vmem:[%s1603_s0 + $0x28] sm:$0xff] }
 0x839   :  { %v472_v16 = vpop.permute.xlu1 %471 }
 0x83a   :  { %v474_v18 = vmul.f32 %v472_v16, %v466_v17 }
 0x83c   :  { %476 = vrot.lane.b32.xlu0 %v474_v18, %s1297_s11 }
 0x8ae   :  { %v477_v22 = vpop.permute.xlu0 %476 }
 0x8af   :  { %v479_v24 = vadd.f32 %v477_v22, %v469_v21 }
 0x8b1   :  { %1172 = vtanh.f32 %v479_v24 }
 0x8b7   :  { %v1173_v25 = vpop.eup %1172 }
 0x8b8   :  { %482 = vrot.lane.b32.xlu1 %v1173_v25, %s1295_s10 }
 0x8c0   :  { %93 = vperm.xlu1 %1138, %v74_v52  }
 0x92a   :  { %v483_v28 = vpop.permute.xlu1 %482 }
 0x92b   :  { %v485_v29 = vmul.f32 %v483_v28, %v466_v17 }
 0x92d   :  { %487 = vrot.lane.b32.xlu2 %v485_v29, %s1297_s11 }
 0x932   :  { %v94_v58 = vpop.permute.xlu1 %93 }
 0x933   :  { %vm106_vm13 = vcmp.eq.s32.totalorder %v1384_v11, %v94_v58 }
 0x934   :  { %v1082_v59 = vsel %vm106_vm13, 1.0, %v1294_v13 }
 0x935   :  { %1090 = vmatmul.msk.f32.gmra.mxu0 %vm125_vm0, %v1082_v59 }
 0x987   :  { %v488_v31 = vpop.permute.xlu2 %487 }
 0x988   :  { %1108 = vmatmul.msk.f32.vlgmr.msrb.gmra.mxu3 %vm194_vm4, %v488_v31  ;;  %v76_v31 = vld [vmem:[%s1603_s0 + $0x38] sm:$0xff] }
 0x989   :  { %755 = vmatpush.msrb.mxu3 %v1368_v7 }
 0x98b   :  { %756 = vmatpush.msrb.mxu3 %v1373_v8 }
 0x98d   :  { %757 = vmatpush.msrb.mxu3 %v1379_v9 }
 0x98f   :  { %758 = vmatpush.msrb.mxu3 %v1398_v19 }
 0x9b2   :  { %v182_v0 = vpop.f32.mrf.mxu0 }
 0x9b3   :  { %1098 = vmatmul.msk.f32.gmra.mxu1 %vm194_vm4, %v182_v0 }
 0xa0b   :  { %v508_v34 = vpop.f32.mrf.mxu3 }
 0xa0c   :  { %v511_v35 = vadd.f32 %v508_v34, %v249_v33 }
 0xa0e   :  { %1174 = vtanh.f32 %v511_v35  ;;  %v1109_v37 = vmul.f32 -1.442695, %v511_v35 }
 0xa10   :  { %1176 = vpow2.f32 %v1109_v37 }
 0xa14   :  { %v1175_v36 = vpop.eup %1174 }
 0xa15   :  { %534 = vrot.lane.b32.xlu0 %v1175_v36, %s1295_s10 }
 0xa16   :  { %v1177_v38 = vpop.eup %1176 }
 0xa17   :  { %v515_v39 = vadd.f32 1.0, %v1177_v38 }
 0xa19   :  { %1178 = vrcp.f32 %v515_v39  ;;  %v527_v19 = vand.u32 2147483648, %v515_v39  ;;  %vm521_vm10 = vweird.f32 %v515_v39  ;;  %v525_v42 = vand.u32 2147483647, %v515_v39 }
 0xa1b   :  { %v528_v48 = vor.u32 1.1754944e-38, %v527_v19  ;;  %vm526_vm12 = vcmp.eq.f32.partialorder %v525_v42, 8.507059e+37 }
 0xa1f   :  { %v1179_v7 = vpop.eup %1178 }
 0xa20   :  { %v517_v8 = vmul.f32 %v1179_v7, %v515_v39  ;;  %vm522_vm9 = vweird.f32 %v1179_v7 }
 0xa21   :  { %vm523_vm11 = vmor %vm521_vm10, %vm522_vm9 }
 0xa22   :  { %v518_v40 = vsub.f32 1.0, %v517_v8 }
 0xa24   :  { %v519_v9 = vmul.f32 %v1179_v7, %v518_v40 }
 0xa26   :  { %v520_v41 = vadd.f32 %v1179_v7, %v519_v9 }
 0xa28   :  { %v524_v47 = vsel %vm523_vm11, %v1179_v7, %v520_v41 }
 0xa29   :  { %v529_v50 = vsel %vm526_vm12, %v528_v48, %v524_v47 }
 0xa2a   :  { %v532_v53 = vmul.f32 %v529_v50, %v479_v24 }
 0xa30   :  { %v251_v3 = vpop.f32.mrf.mxu1 }
 0xa31   :  { %v252_v4 = vadd.f32 %v1407_v23, %v251_v3 }
 0xa87   :  { %v535_v49 = vpop.permute.xlu0 %534 }
 0xa88   :  { %v537_v51 = vmul.f32 %v535_v49, %v529_v50 }
 0xa8a   :  { %539 = vrot.lane.b32.xlu2 %v537_v51, %s1297_s11 }
 0xae4   :  { %v540_v54 = vpop.permute.xlu2 %539 }
 0xae5   :  { %v542_v55 = vadd.f32 %v540_v54, %v532_v53 }
 0xae7   :  { %1180 = vtanh.f32 %v542_v55 }
 0xaed   :  { %v1181_v56 = vpop.eup %1180 }
 0xaee   :  { %545 = vrot.lane.b32.xlu0 %v1181_v56, %s1295_s10 }
 0xaf6   :  { %96 = vperm.xlu0 %1136, %v75_v57  }
 0xb60   :  { %v546_v60 = vpop.permute.xlu0 %545 }
 0xb61   :  { %v548_v61 = vmul.f32 %v546_v60, %v529_v50  ;;  %v261_v60 = vshrl.u32 %v67_v10, 7 }
 0xb63   :  { %550 = vrot.lane.b32.xlu1 %v548_v61, %s1297_s11  ;;  %vm675_vm9 = vcmp.lt.s32.totalorder %v261_v60, 2 }
 0xb68   :  { %v97_v62 = vpop.permute.xlu0 %96 }
 0xb69   :  { %vm107_vm14 = vcmp.eq.s32.totalorder %v1384_v11, %v97_v62 }
 0xb6a   :  { %v1083_v63 = vsel %vm107_vm14, 1.0, %v1294_v13 }
 0xb6b   :  { %1091 = vmatmul.msk.f32.gmra.mxu0 %vm125_vm0, %v1083_v63 }
 0xbd5   :  { %v551_v1 = vpop.permute.xlu1 %550 }
 0xbd6   :  { %1110 = vmatmul.msk.f32.vlgmr.msra.gmra.mxu2 %vm194_vm4, %v551_v1 }
 0xbd7   :  { %811 = vmatpush.msra.mxu2 %v1416_v43 }
 0xbd9   :  { %812 = vmatpush.msra.mxu2 %v1421_v44 }
 0xbdb   :  { %813 = vmatpush.msra.mxu2 %v1428_v45 }
 0xbdd   :  { %814 = vmatpush.msra.mxu2 %v1435_v46 }
 0xbe8   :  { %v185_v2 = vpop.f32.mrf.mxu0 }
 0xbe9   :  { %1099 = vmatmul.msk.f32.gmra.mxu1 %vm194_vm4, %v185_v2 }
 0xc59   :  { %v571_v5 = vpop.f32.mrf.mxu2 }
 0xc5a   :  { %v574_v6 = vadd.f32 %v571_v5, %v252_v4 }
 0xc5c   :  { %1182 = vtanh.f32 %v574_v6  ;;  %v1111_v14 = vmul.f32 -1.442695, %v574_v6 }
 0xc5e   :  { %1184 = vpow2.f32 %v1111_v14 }
 0xc62   :  { %v1183_v12 = vpop.eup %1182 }
 0xc63   :  { %597 = vrot.lane.b32.xlu2 %v1183_v12, %s1295_s10 }
 0xc64   :  { %v1185_v43 = vpop.eup %1184 }
 0xc65   :  { %v578_v44 = vadd.f32 1.0, %v1185_v43 }
 0xc66   :  { %v254_v38 = vpop.f32.mrf.mxu1 }
 0xc67   :  { %1186 = vrcp.f32 %v578_v44  ;;  %v590_v18 = vand.u32 2147483648, %v578_v44  ;;  %vm584_vm1 = vweird.f32 %v578_v44  ;;  %v588_v20 = vand.u32 2147483647, %v578_v44 }
 0xc68   :  { %v255_v39 = vadd.f32 %v1407_v23, %v254_v38 }
 0xc69   :  { %v591_v22 = vor.u32 1.1754944e-38, %v590_v18  ;;  %vm589_vm3 = vcmp.eq.f32.partialorder %v588_v20, 8.507059e+37 }
 0xc6d   :  { %v1187_v45 = vpop.eup %1186 }
 0xc6e   :  { %v580_v15 = vmul.f32 %v1187_v45, %v578_v44  ;;  %vm585_vm15 = vweird.f32 %v1187_v45 }
 0xc6f   :  { %vm586_vm2 = vmor %vm584_vm1, %vm585_vm15 }
 0xc70   :  { %v581_v46 = vsub.f32 1.0, %v580_v15 }
 0xc72   :  { %v582_v16 = vmul.f32 %v1187_v45, %v581_v46 }
 0xc74   :  { %v583_v17 = vadd.f32 %v1187_v45, %v582_v16 }
 0xc76   :  { %v587_v21 = vsel %vm586_vm2, %v1187_v45, %v583_v17 }
 0xc77   :  { %v592_v25 = vsel %vm589_vm3, %v591_v22, %v587_v21 }
 0xc78   :  { %v595_v27 = vmul.f32 %v592_v25, %v542_v55 }
 0xcbd   :  { %v598_v24 = vpop.permute.xlu2 %597 }
 0xcbe   :  { %v600_v26 = vmul.f32 %v598_v24, %v592_v25 }
 0xcc0   :  { %602 = vrot.lane.b32.xlu1 %v600_v26, %s1297_s11 }
 0xd32   :  { %v603_v28 = vpop.permute.xlu1 %602 }
 0xd33   :  { %v1526_v29 = vadd.f32 %v603_v28, %v595_v27 }
 0xd35   :  { %1188 = vtanh.f32 %v1526_v29 }
 0xd3b   :  { %v1189_v30 = vpop.eup %1188 }
 0xd3c   :  { %608 = vrot.lane.b32.xlu2 %v1189_v30, %s1295_s10 }
 0xd44   :  { %99 = vperm.xlu2 %1137, %v76_v31  }
 0xd96   :  { %v609_v32 = vpop.permute.xlu2 %608 }
 0xd97   :  { %v611_v33 = vmul.f32 %v609_v32, %v592_v25 }
 0xd99   :  { %613 = vrot.lane.b32.xlu0 %v611_v33, %s1297_s11 }
 0xd9e   :  { %v100_v34 = vpop.permute.xlu2 %99 }
 0xd9f   :  { %vm108_vm5 = vcmp.eq.s32.totalorder %v1384_v11, %v100_v34 }
 0xda0   :  { %v1084_v35 = vsel %vm108_vm5, 1.0, %v1294_v13 }
 0xda1   :  { %1092 = vmatmul.msk.f32.gmra.mxu0 %vm125_vm0, %v1084_v35 }
 0xe0b   :  { %v614_v36 = vpop.permute.xlu0 %613 }
 0xe0c   :  { %1112 = vmatmul.msk.f32.vlgmr.msra.gmra.mxu3 %vm194_vm4, %v614_v36 }
 0xe1e   :  { %v188_v37 = vpop.f32.mrf.mxu0 }
 0xe1f   :  { %1100 = vmatmul.msk.f32.gmra.mxu1 %vm194_vm4, %v188_v37 }
 0xe8f   :  { %v634_v7 = vpop.f32.mrf.mxu3 }
 0xe90   :  { %v637_v8 = vadd.f32 %v634_v7, %v255_v39 }
 0xe92   :  { %1190 = vtanh.f32 %v637_v8  ;;  %v1113_v11 = vmul.f32 -1.442695, %v637_v8 }
 0xe94   :  { %1192 = vpow2.f32 %v1113_v11 }
 0xe98   :  { %v1191_v40 = vpop.eup %1190 }
 0xe99   :  { %660 = vrot.lane.b32.xlu1 %v1191_v40, %s1295_s10 }
 0xe9a   :  { %v1193_v13 = vpop.eup %1192 }
 0xe9b   :  { %v641_v9 = vadd.f32 1.0, %v1193_v13 }
 0xe9c   :  { %v257_v1 = vpop.f32.mrf.mxu1 }
 0xe9d   :  { %1194 = vrcp.f32 %v641_v9  ;;  %v653_v49 = vand.u32 2147483648, %v641_v9  ;;  %vm647_vm6 = vweird.f32 %v641_v9  ;;  %v651_v50 = vand.u32 2147483647, %v641_v9 }
 0xe9e   :  { %v258_v2 = vadd.f32 %v1407_v23, %v257_v1 }
 0xe9f   :  { %v654_v52 = vor.u32 1.1754944e-38, %v653_v49  ;;  %vm652_vm8 = vcmp.eq.f32.partialorder %v651_v50, 8.507059e+37  ;;  %v58_v49 = vld [vmem:[#allocation2 + $0x8] sm:$0xff]  ;;  %v57_v50 = vld [vmem:[#allocation2] sm:$0xff] }
 0xea3   :  { %v1195_v41 = vpop.eup %1194 }
 0xea4   :  { %v643_v19 = vmul.f32 %v1195_v41, %v641_v9  ;;  %vm648_vm0 = vweird.f32 %v1195_v41 }
 0xea5   :  { %vm649_vm7 = vmor %vm647_vm6, %vm648_vm0 }
 0xea6   :  { %v644_v42 = vsub.f32 1.0, %v643_v19 }
 0xea8   :  { %v645_v47 = vmul.f32 %v1195_v41, %v644_v42 }
 0xeaa   :  { %v646_v48 = vadd.f32 %v1195_v41, %v645_v47  ;;  %v60_v47 = vld [vmem:[#allocation2 + $0x18] sm:$0xff] }
 0xeab   :  { %880 = vmatpush.msra.mxu3 %v60_v47 }
 0xeac   :  { %v650_v51 = vsel %vm649_vm7, %v1195_v41, %v646_v48  ;;  %v59_v48 = vld [vmem:[#allocation2 + $0x10] sm:$0xff] }
 0xead   :  { %v655_v54 = vsel %vm652_vm8, %v654_v52, %v650_v51  ;;  %881 = vmatpush.msra.mxu3 %v59_v48 }
 0xeae   :  { %v658_v56 = vmul.f32 %v655_v54, %v1526_v29 }
 0xeaf   :  { %882 = vmatpush.msra.mxu3 %v58_v49 }
 0xeb1   :  { %883 = vmatpush.msra.mxu3 %v57_v50 }
 0xf0b   :  { %v661_v53 = vpop.permute.xlu1 %660 }
 0xf0c   :  { %v663_v55 = vmul.f32 %v661_v53, %v655_v54 }
 0xf0e   :  { %665 = vrot.lane.b32.xlu0 %v663_v55, %s1297_s11 }
 0xf80   :  { %v666_v57 = vpop.permute.xlu0 %665 }
 0xf81   :  { %v668_v58 = vadd.f32 %v666_v57, %v658_v56  ;;  %v1567_v57 = vld [vmem:[%s1608_s5] ss:$0 sm:$0xff] }
 0xf83   :  { %1196 = vtanh.f32 %v668_v58  ;;  %v679_v24 = vsel %vm675_vm9, %v668_v58, %v1526_v29 }
 0xf89   :  { %v1197_v59 = vpop.eup %1196 }
 0xf8a   :  { %671 = vrot.lane.b32.xlu1 %v1197_v59, %s1295_s10 }
 0xffc   :  { %v672_v61 = vpop.permute.xlu1 %671 }
 0xffd   :  { %v674_v62 = vmul.f32 %v672_v61, %v655_v54 }
 0xfff   :  { %v678_v63 = vsel %vm675_vm9, %v674_v62, %v611_v33 }
0x1000   :  { %681 = vrot.lane.b32.xlu2 %v678_v63, %s1297_s11 }
0x105a   :  { %v682_v0 = vpop.permute.xlu2 %681 }
0x105b   :  { %1114 = vmatmul.msk.f32.vlgmr.msrb.gmra.mxu2 %vm194_vm4, %v682_v0 }
0x105c   :  { %937 = vmatpush.msrb.mxu2 %v60_v47 }
0x105e   :  { %938 = vmatpush.msrb.mxu2 %v59_v48 }
0x1060   :  { %939 = vmatpush.msrb.mxu2 %v58_v49 }
0x1062   :  { %940 = vmatpush.msrb.mxu2 %v57_v50 }
0x10de   :  { %v702_v3 = vpop.f32.mrf.mxu2 }
0x10df   :  { %v705_v4 = vadd.f32 %v702_v3, %v258_v2 }
0x10e1   :  { %1198 = vtanh.f32 %v705_v4  ;;  %v1115_v10 = vmul.f32 -1.442695, %v705_v4 }
0x10e3   :  { %1200 = vpow2.f32 %v1115_v10 }
0x10e7   :  { %v1199_v5 = vpop.eup %1198 }
0x10e8   :  { %728 = vrot.lane.b32.xlu0 %v1199_v5, %s1295_s10 }
0x10e9   :  { %v1201_v6 = vpop.eup %1200 }
0x10ea   :  { %v709_v12 = vadd.f32 1.0, %v1201_v6 }
0x10ec   :  { %1202 = vrcp.f32 %v709_v12  ;;  %v721_v46 = vand.u32 2147483648, %v709_v12  ;;  %vm715_vm11 = vweird.f32 %v709_v12  ;;  %v719_v16 = vand.u32 2147483647, %v709_v12 }
0x10ee   :  { %v722_v18 = vor.u32 1.1754944e-38, %v721_v46  ;;  %vm720_vm13 = vcmp.eq.f32.partialorder %v719_v16, 8.507059e+37 }
0x10f2   :  { %v1203_v14 = vpop.eup %1202 }
0x10f3   :  { %v711_v43 = vmul.f32 %v1203_v14, %v709_v12  ;;  %vm716_vm10 = vweird.f32 %v1203_v14 }
0x10f4   :  { %vm717_vm12 = vmor %vm715_vm11, %vm716_vm10 }
0x10f5   :  { %v712_v44 = vsub.f32 1.0, %v711_v43 }
0x10f7   :  { %v713_v45 = vmul.f32 %v1203_v14, %v712_v44 }
0x10f9   :  { %v714_v15 = vadd.f32 %v1203_v14, %v713_v45 }
0x10fb   :  { %v718_v17 = vsel %vm717_vm12, %v1203_v14, %v714_v15 }
0x10fc   :  { %v723_v21 = vsel %vm720_vm13, %v722_v18, %v718_v17 }
0x10fd   :  { %v726_v25 = vmul.f32 %v723_v21, %v679_v24 }
0x115a   :  { %v729_v20 = vpop.permute.xlu0 %728 }
0x115b   :  { %v731_v22 = vmul.f32 %v729_v20, %v723_v21 }
0x115d   :  { %733 = vrot.lane.b32.xlu1 %v731_v22, %s1297_s11 }
0x11cf   :  { %v734_v26 = vpop.permute.xlu1 %733 }
0x11d0   :  { %v736_v27 = vadd.f32 %v734_v26, %v726_v25 }
0x11d2   :  { %v737_v28 = vsel %vm675_vm9, %v736_v27, %v1526_v29 }
0x11d3   :  { %739 = vrot.lane.b32.xlu2 %v737_v28, %s1296_s3 }
0x122d   :  { %v740_v30 = vpop.permute.xlu2 %739 }
0x122e   :  { %1116 = vmatmul.msk.f32.vlgmr.msrb.gmra.mxu3 %vm194_vm4, %v740_v30 }
0x12b1   :  { %v760_v31 = vpop.f32.mrf.mxu3 }
0x12b2   :  { %v761_v32 = vadd.f32 %v1407_v23, %v760_v31 }
0x12b4   :  { %1204 = vtanh.f32 %v761_v32  ;;  %v1117_v34 = vmul.f32 -1.442695, %v761_v32 }
0x12b6   :  { %1206 = vpow2.f32 %v1117_v34 }
0x12ba   :  { %v1205_v33 = vpop.eup %1204 }
0x12bb   :  { %784 = vrot.lane.b32.xlu0 %v1205_v33, %s1295_s10 }
0x12bc   :  { %v1207_v35 = vpop.eup %1206 }
0x12bd   :  { %v766_v36 = vadd.f32 1.0, %v1207_v35 }
0x12bf   :  { %1208 = vrcp.f32 %v766_v36  ;;  %v778_v8 = vand.u32 2147483648, %v766_v36  ;;  %vm772_vm15 = vweird.f32 %v766_v36  ;;  %v776_v40 = vand.u32 2147483647, %v766_v36 }
0x12c1   :  { %v779_v11 = vor.u32 1.1754944e-38, %v778_v8  ;;  %vm777_vm2 = vcmp.eq.f32.partialorder %v776_v40, 8.507059e+37  ;;  %v62_v8 = vld [vmem:[#allocation2 + $0x28] sm:$0xff]  ;;  %v61_v40 = vld [vmem:[#allocation2 + $0x20] sm:$0xff] }
0x12c5   :  { %v1209_v37 = vpop.eup %1208 }
0x12c6   :  { %v768_v38 = vmul.f32 %v1209_v37, %v766_v36  ;;  %vm773_vm14 = vweird.f32 %v1209_v37 }
0x12c7   :  { %vm774_vm1 = vmor %vm772_vm15, %vm773_vm14 }
0x12c8   :  { %v769_v29 = vsub.f32 1.0, %v768_v38 }
0x12ca   :  { %v770_v39 = vmul.f32 %v1209_v37, %v769_v29 }
0x12cc   :  { %v771_v7 = vadd.f32 %v1209_v37, %v770_v39  ;;  %v64_v39 = vld [vmem:[#allocation2 + $0x38] sm:$0xff] }
0x12cd   :  { %962 = vmatpush.msrb.mxu3 %v64_v39 }
0x12ce   :  { %v775_v23 = vsel %vm774_vm1, %v1209_v37, %v771_v7  ;;  %v63_v7 = vld [vmem:[#allocation2 + $0x30] sm:$0xff] }
0x12cf   :  { %v780_v9 = vsel %vm777_vm2, %v779_v11, %v775_v23  ;;  %963 = vmatpush.msrb.mxu3 %v63_v7  ;;  %vm1058_vm2 = vcmask 9216  }
0x12d1   :  { %964 = vmatpush.msrb.mxu3 %v62_v8 }
0x12d3   :  { %965 = vmatpush.msrb.mxu3 %v61_v40 }
0x132d   :  { %v785_v13 = vpop.permute.xlu0 %784 }
0x132e   :  { %v787_v41 = vmul.f32 %v785_v13, %v780_v9 }
0x1330   :  { %1210 = vtanh.f32 %v787_v41  ;;  %v844_v42 = vrot.slane %v787_v41, 6 }
0x1336   :  { %v1211_v19 = vpop.eup %1210 }
0x1337   :  { %790 = vrot.lane.b32.xlu1 %v1211_v19, %s1296_s3 }
0x133f   :  { %845 = vrot.lane.b32.xlu1 %v844_v42, %s1297_s11 }
0x13a9   :  { %v791_v51 = vpop.permute.xlu1 %790 }
0x13aa   :  { %v793_v52 = vmul.f32 %v791_v51, %v780_v9 }
0x13ac   :  { %795 = vrot.lane.b32.xlu2 %v793_v52, %s1297_s11 }
0x13b1   :  { %v846_v33 = vpop.permute.xlu1 %845 }
0x1406   :  { %v796_v53 = vpop.permute.xlu2 %795 }
0x1407   :  { %1118 = vmatmul.msk.f32.vlgmr.msra.gmra.mxu2 %vm194_vm4, %v796_v53  ;;  %1120 = vmatmul.msk.f32.vlgmr.msra.gmra.mxu3 %vm194_vm4, %v796_v53 }
0x148a   :  { %v816_v54 = vpop.f32.mrf.mxu2  ;;  %v885_v58 = vpop.f32.mrf.mxu3 }
0x148b   :  { %v820_v55 = vrot.slane %v816_v54, 6  ;;  %v886_v59 = vadd.f32 %v1567_v57, %v885_v58 }
0x148d   :  { %v822_v56 = vadd.f32 %v820_v55, %v761_v32  ;;  %v1121_v63 = vmul.f32 -1.442695, %v886_v59 }
0x148f   :  { %1212 = vtanh.f32 %v822_v56  ;;  %v1119_v62 = vmul.f32 -1.442695, %v822_v56 }
0x1490   :  { %1214 = vtanh.f32 %v886_v59 }
0x1491   :  { %1216 = vpow2.f32 %v1119_v62 }
0x1492   :  { %1218 = vpow2.f32 %v1121_v63 }
0x1495   :  { %v1213_v60 = vpop.eup %1212 }
0x1496   :  { %850 = vrot.lane.b32.xlu0 %v1213_v60, %s1295_s10  ;;  %v1215_v61 = vpop.eup %1214 }
0x1497   :  { %v1217_v0 = vpop.eup %1216 }
0x1498   :  { %v826_v1 = vadd.f32 1.0, %v1217_v0  ;;  %v1219_v2 = vpop.eup %1218 }
0x1499   :  { %v891_v3 = vadd.f32 1.0, %v1219_v2  ;;  %v1008_v2 = vld [vmem:[%s1609_s6 + $0x10] sm:$0xff] }
0x149a   :  { %1220 = vrcp.f32 %v826_v1  ;;  %v838_v45 = vand.u32 2147483648, %v826_v1  ;;  %vm832_vm5 = vweird.f32 %v826_v1  ;;  %v836_v15 = vand.u32 2147483647, %v826_v1 }
0x149b   :  { %1222 = vrcp.f32 %v891_v3  ;;  %v903_v24 = vand.u32 2147483648, %v891_v3  ;;  %vm897_vm8 = vweird.f32 %v891_v3  ;;  %v901_v25 = vand.u32 2147483647, %v891_v3 }
0x149c   :  { %v839_v17 = vor.u32 1.1754944e-38, %v838_v45  ;;  %vm837_vm6 = vcmp.eq.f32.partialorder %v836_v15, 8.507059e+37 }
0x149d   :  { %v904_v27 = vor.u32 1.1754944e-38, %v903_v24  ;;  %vm902_vm10 = vcmp.eq.f32.partialorder %v901_v25, 8.507059e+37 }
0x149e   :  { %909 = vrot.lane.b32.xlu0 %v1215_v61, %s1295_s10 }
0x14a0   :  { %v1221_v4 = vpop.eup %1220 }
0x14a1   :  { %v828_v5 = vmul.f32 %v1221_v4, %v826_v1  ;;  %v1223_v6 = vpop.eup %1222  ;;  %vm833_vm3 = vweird.f32 %v1221_v4  ;;  %v1009_v1 = vld [vmem:[%s1609_s6 + $0x18] sm:$0xff] }
0x14a2   :  { %v893_v14 = vmul.f32 %v1223_v6, %v891_v3  ;;  %vm834_vm0 = vmor %vm832_vm5, %vm833_vm3  ;;  %vm898_vm7 = vweird.f32 %v1223_v6  ;;  %1031 = vmatpush.msra.mxu2 %v1009_v1  ;;  %v1007_v3 = vld [vmem:[%s1609_s6 + $0x8] sm:$0xff] }
0x14a3   :  { %v829_v10 = vsub.f32 1.0, %v828_v5  ;;  %vm899_vm9 = vmor %vm897_vm8, %vm898_vm7 }
0x14a4   :  { %v894_v44 = vsub.f32 1.0, %v893_v14  ;;  %1032 = vmatpush.msra.mxu2 %v1008_v2 }
0x14a5   :  { %v830_v12 = vmul.f32 %v1221_v4, %v829_v10 }
0x14a6   :  { %v895_v16 = vmul.f32 %v1223_v6, %v894_v44  ;;  %1033 = vmatpush.msra.mxu2 %v1007_v3 }
0x14a7   :  { %v831_v43 = vadd.f32 %v1221_v4, %v830_v12 }
0x14a8   :  { %v896_v22 = vadd.f32 %v1223_v6, %v895_v16 }
0x14a9   :  { %v835_v46 = vsel %vm834_vm0, %v1221_v4, %v831_v43  ;;  %v1006_v4 = vld [vmem:[%s1609_s6] sm:$0xff]  ;;  %s1298_s6 = smov [#allocation5]  }
0x14aa   :  { %v840_v20 = vsel %vm837_vm6, %v839_v17, %v835_v46  ;;  %v900_v26 = vsel %vm899_vm9, %v1223_v6, %v896_v22  ;;  %1034 = vmatpush.msra.mxu2 %v1006_v4  ;;  %v1141_v43 = vld [vmem:[%s1610_s7] ss:$0 sm:$0xff]  ;;  %s1067_s7 = sshll.u32 %s1611_s8, 4  ;;  %s1068_s7 = int_to_ptr.hbm [resolvable:$true] %s1067_s7 }
0x14ab   :  { %v905_v28 = vsel %vm902_vm10, %v904_v27, %v900_v26  ;;  %v848_v34 = vmul.f32 %v846_v33, %v840_v20 }
0x1508   :  { %v851_v18 = vpop.permute.xlu0 %850 }
0x1509   :  { %v853_v21 = vmul.f32 %v851_v18, %v840_v20 }
0x150b   :  { %855 = vrot.lane.b32.xlu2 %v853_v21, %s1297_s11 }
0x1510   :  { %v910_v30 = vpop.permute.xlu0 %909 }
0x1511   :  { %v912_v31 = vmul.f32 %v910_v30, %v905_v28 }
0x1513   :  { %1224 = vtanh.f32 %v912_v31 }
0x1519   :  { %v1225_v32 = vpop.eup %1224 }
0x151a   :  { %915 = vrot.lane.b32.xlu2 %v1225_v32, %s1296_s3 }
0x1565   :  { %v856_v35 = vpop.permute.xlu2 %855 }
0x1566   :  { %v858_v36 = vadd.f32 %v856_v35, %v848_v34 }
0x1568   :  { %1226 = vtanh.f32 %v858_v36 }
0x156e   :  { %v1227_v37 = vpop.eup %1226 }
0x156f   :  { %861 = vrot.lane.b32.xlu1 %v1227_v37, %s1295_s10 }
0x1574   :  { %v916_v38 = vpop.permute.xlu2 %915 }
0x1575   :  { %v918_v29 = vmul.f32 %v916_v38, %v905_v28 }
0x1577   :  { %946 = vrot.lane.b32.xlu1 %v918_v29, %s1297_s11 }
0x15e1   :  { %v862_v23 = vpop.permute.xlu1 %861 }
0x15e2   :  { %v864_v11 = vmul.f32 %v862_v23, %v840_v20 }
0x15e4   :  { %v920_v13 = vrot.slane %v864_v11, 2 }
0x15e6   :  { %921 = vrot.lane.b32.xlu0 %v920_v13, %s1297_s11 }
0x15e9   :  { %v947_v9 = vpop.permute.xlu1 %946 }
0x15ea   :  { %1123 = vmatmul.msk.f32.vlgmr.msrb.gmra.mxu3 %vm194_vm4, %v947_v9 }
0x15ee   :  { %992 = vrot.lane.b32.xlu0 %v912_v31, %s1297_s11 }
0x1658   :  { %v922_v41 = vpop.permute.xlu0 %921 }
0x1659   :  { %1122 = vmatmul.msk.f32.vlgmr.msrb.gmra.mxu2 %vm194_vm4, %v922_v41 }
0x1660   :  { %v993_v5 = vpop.permute.xlu0 %992 }
0x166d   :  { %v967_v47 = vpop.f32.mrf.mxu3 }
0x16dc   :  { %v942_v19 = vpop.f32.mrf.mxu2 }
0x16dd   :  { %v943_v42 = vadd.f32 %v1567_v57, %v942_v19 }
0x16df   :  { %v970_v48 = vadd.f32 %v967_v47, %v943_v42 }
0x16e1   :  { %1228 = vtanh.f32 %v970_v48  ;;  %v1124_v50 = vmul.f32 -1.442695, %v970_v48 }
0x16e3   :  { %1230 = vpow2.f32 %v1124_v50 }
0x16e7   :  { %v1229_v49 = vpop.eup %1228 }
0x16e8   :  { %997 = vrot.lane.b32.xlu2 %v1229_v49, %s1295_s10 }
0x16e9   :  { %v1231_v51 = vpop.eup %1230 }
0x16ea   :  { %v974_v52 = vadd.f32 1.0, %v1231_v51 }
0x16ec   :  { %1232 = vrcp.f32 %v974_v52  ;;  %v986_v59 = vand.u32 2147483648, %v974_v52  ;;  %vm980_vm12 = vweird.f32 %v974_v52  ;;  %v984_v57 = vand.u32 2147483647, %v974_v52 }
0x16ee   :  { %v987_v61 = vor.u32 1.1754944e-38, %v986_v59  ;;  %vm985_vm14 = vcmp.eq.f32.partialorder %v984_v57, 8.507059e+37 }
0x16f2   :  { %v1233_v53 = vpop.eup %1232 }
0x16f3   :  { %v976_v54 = vmul.f32 %v1233_v53, %v974_v52  ;;  %vm981_vm11 = vweird.f32 %v1233_v53 }
0x16f4   :  { %vm982_vm13 = vmor %vm980_vm12, %vm981_vm11 }
0x16f5   :  { %v977_v55 = vsub.f32 1.0, %v976_v54 }
0x16f7   :  { %v978_v56 = vmul.f32 %v1233_v53, %v977_v55 }
0x16f9   :  { %v979_v58 = vadd.f32 %v1233_v53, %v978_v56 }
0x16fb   :  { %v983_v60 = vsel %vm982_vm13, %v1233_v53, %v979_v58 }
0x16fc   :  { %v988_v63 = vsel %vm985_vm14, %v987_v61, %v983_v60 }
0x16fd   :  { %v995_v10 = vmul.f32 %v993_v5, %v988_v63 }
0x1742   :  { %v998_v62 = vpop.permute.xlu2 %997 }
0x1743   :  { %v1000_v0 = vmul.f32 %v998_v62, %v988_v63 }
0x1745   :  { %1002 = vrot.lane.b32.xlu1 %v1000_v0, %s1297_s11 }
0x17b7   :  { %v1003_v6 = vpop.permute.xlu1 %1002 }
0x17b8   :  { %v1005_v12 = vadd.f32 %v1003_v6, %v995_v10 }
0x17ba   :  { %1015 = vrot.lane.b32.xlu2 %v1005_v12, %s1296_s3  ;;  %s1065_s3 = sshll.u32 %s1298_s6, 4  ;;  %s1066_s3 = int_to_ptr.vmem [resolvable:$true] %s1065_s3 }
0x1814   :  { %v1016_v14 = vpop.permute.xlu2 %1015 }
0x1815   :  { %1125 = vmatmul.msk.f32.vlgmr.msra.gmra.mxu2 %vm194_vm4, %v1016_v14 }
0x1898   :  { %v1036_v44 = vpop.f32.mrf.mxu2 }
0x1899   :  { %v1037_v45 = vadd.f32 %v1141_v43, %v1036_v44 }
0x189b   :  { %v1126_v15 = vmul.f32 -1.442695, %v1037_v45 }
0x189d   :  { %1234 = vpow2.f32 %v1126_v15 }
0x18a3   :  { %v1235_v46 = vpop.eup %1234 }
0x18a4   :  { %v1042_v16 = vadd.f32 1.0, %v1235_v46 }
0x18a6   :  { %1236 = vrcp.f32 %v1042_v16  ;;  %v1054_v21 = vand.u32 2147483648, %v1042_v16  ;;  %v1052_v24 = vand.u32 2147483647, %v1042_v16  ;;  %vm1048_vm4 = vweird.f32 %v1042_v16 }
0x18a8   :  { %v1055_v26 = vor.u32 1.1754944e-38, %v1054_v21  ;;  %vm1053_vm3 = vcmp.eq.f32.partialorder %v1052_v24, 8.507059e+37 }
0x18ac   :  { %v1237_v17 = vpop.eup %1236 }
0x18ad   :  { %v1044_v18 = vmul.f32 %v1237_v17, %v1042_v16  ;;  %vm1049_vm15 = vweird.f32 %v1237_v17 }
0x18ae   :  { %vm1050_vm1 = vmor %vm1048_vm4, %vm1049_vm15 }
0x18af   :  { %v1045_v20 = vsub.f32 1.0, %v1044_v18 }
0x18b1   :  { %v1046_v22 = vmul.f32 %v1237_v17, %v1045_v20 }
0x18b3   :  { %v1047_v25 = vadd.f32 %v1237_v17, %v1046_v22 }
0x18b5   :  { %v1051_v27 = vsel %vm1050_vm1, %v1237_v17, %v1047_v25 }
0x18b6   :  { %v1056_v28 = vsel %vm1053_vm3, %v1055_v26, %v1051_v27 }
0x18b7   :  { %1059 = vst.msk [vmem:[#allocation5] sm:$0x3] %vm1058_vm2, %v1056_v28 }
0x18b8   :  { %1070 = dma.vmem_to_hbm [thread:$0]  %s1066_s3, 32, %s1068_s7, [#allocation4]  }
0x18b9   :  { %1288 = dma.done.wait [#allocation4], 32  }
0x18ba   :  { %1289 = vsyncadd [#allocation4], 4294967264 }
0x18bb   :  { %1075 = vsyncpa [#allocation3], 1 }
0x18bc   :  { %1076 = vsyncpa [#allocation4], 1 }

</bundles_post_ra>
